<compile_context>
chip_gen: v7x
topology: tpu7x:2x2x1
jax: 0.10.0
libtpu: 0.0.40
codegen_flags: <defaults>
</compile_context>

<pallas_src>
import functools
import math

import jax
import jax.numpy as jnp
from jax.experimental import pallas as pl
from jax.experimental.pallas import tpu as pltpu


NEG_INF = -1e30  # plain Python float literal (never a captured array constant)


def aligned_attention_kernel(
    p_ref,      # (Bt, Pp, Hp)  bf16 context block
    q_ref,      # (Bt, Qp, Hp)  bf16 question block
    pmask_ref,  # (Bt, 1, Pp)   f32 {0,1} context mask (lane-dense)
    qmask_ref,  # (Bt, 1, Qp)   f32 {0,1} question mask (lane-dense)
    pw_ref,     # (1, 1, Hp)    f32 p_weight
    qw_ref,     # (1, 1, Hp)    f32 q_weight
    cqw_ref,    # (1, 1, Hp)    f32 cq_weight
    pt_ref,     # (Bt, Pp, Hp)  out: p_tilde
    qt_ref,     # (Bt, Qp, Hp)  out: q_tilde
    *,
    use_bf16_exp: bool,
):
    f32 = jnp.float32
    bf16 = jnp.bfloat16
    exp_dtype = bf16 if use_bf16_exp else f32

    Bt, Pp, Hp = p_ref.shape
    Qp = q_ref.shape[1]

    p_b = p_ref[...]                       # (Bt, Pp, Hp) bf16
    q_b = q_ref[...]                       # (Bt, Qp, Hp) bf16
    cqw = cqw_ref[...]                     # (1, 1, Hp)  f32

    # cq_weight applied to the (smaller) question side; one bf16 MXU operand.
    q_cq = (q_b.astype(f32) * cqw).astype(bf16)                 # (Bt, Qp, Hp)

    # Rank-1 similarity terms computed on the already-resident blocks (lane
    # axis VPU multiply-reduce); the scalar bias and the term constant along
    # each softmax axis cancel under softmax and are dropped.
    s0 = jnp.sum(p_b.astype(f32) * pw_ref[...], axis=-1).reshape(Bt, 1, Pp)
    s1 = jnp.sum(q_b.astype(f32) * qw_ref[...], axis=-1).reshape(Bt, 1, Qp)

    # Additive logit biases (NaN-safe, equivalent to the multiplicative blend).
    qbias = s1 + (1.0 - qmask_ref[...]) * NEG_INF               # (Bt, 1, Qp)
    pbias = s0 + (1.0 - pmask_ref[...]) * NEG_INF               # (Bt, 1, Pp)

    # ---- softmax over the question axis (lane axis) -> p_tilde --------------
    s2 = jnp.einsum('bph,bqh->bpq', p_b, q_cq,
                    preferred_element_type=f32)                 # (Bt, Pp, Qp)
    logits_q = s2 + qbias
    m_q = jnp.max(logits_q, axis=-1, keepdims=True)
    e_q = jnp.exp((logits_q - m_q).astype(exp_dtype))
    inv_q = pl.reciprocal(
        jnp.sum(e_q.astype(f32), axis=-1, keepdims=True), approx=True)
    if Hp <= Qp:
        # Fold the 1/sum into the (smaller) matmul output instead of scaling
        # the (Pp, Qp) attention-weight tile.
        pt = jnp.einsum('bpq,bqh->bph', e_q.astype(bf16), q_b,
                        preferred_element_type=f32) * inv_q
    else:
        a_q = (e_q.astype(f32) * inv_q).astype(bf16)
        pt = jnp.einsum('bpq,bqh->bph', a_q, q_b, preferred_element_type=f32)
    pt_ref[...] = pt.astype(pt_ref.dtype)

    # ---- softmax over the context axis -> q_tilde ---------------------------
    # Second MXU call produces the similarity already transposed so the
    # reduction stays on the lane axis and the q_tilde contraction is a plain
    # NN matmul (no sublane reduction, no implied LHS transpose/relayout).
    s2t = jnp.einsum('bqh,bph->bqp', q_cq, p_b,
                     preferred_element_type=f32)                # (Bt, Qp, Pp)
    logits_p = s2t + pbias
    m_p = jnp.max(logits_p, axis=-1, keepdims=True)
    e_p = jnp.exp((logits_p - m_p).astype(exp_dtype))
    inv_p = pl.reciprocal(
        jnp.sum(e_p.astype(f32), axis=-1, keepdims=True), approx=True)
    if Hp <= Pp:
        qt = jnp.einsum('bqp,bph->bqh', e_p.astype(bf16), p_b,
                        preferred_element_type=f32) * inv_p
    else:
        a_p = (e_p.astype(f32) * inv_p).astype(bf16)
        qt = jnp.einsum('bqp,bph->bqh', a_p, p_b, preferred_element_type=f32)
    qt_ref[...] = qt.astype(qt_ref.dtype)


def _round_up(x, m):
    return (x + m - 1) // m * m


def _pad_to(x, shape):
    """Zero-pad x up to `shape`; no-op (no extra HBM pass) if already aligned."""
    if tuple(x.shape) == tuple(shape):
        return x
    pads = [(0, t - s) for s, t in zip(x.shape, shape)]
    return jnp.pad(x, pads)


def _tpu_vmem_capacity_bytes():
    try:
        return int(pltpu.get_tpu_info().vmem_capacity_bytes)
    except Exception:
        return 64 * 1024 * 1024   # conservative fallback (v7x per-TC VMEM)


def _tpu_kind():
    try:
        return jax.devices()[0].device_kind.lower()
    except Exception:
        return ""


def aligned_attention(p, q, p_mask, q_mask, p_weight, q_weight, cq_weight,
                      bias, *, batch_block=None, out_dtype=jnp.bfloat16):
    """Fused SLQA AlignedAttention forward (eval mode).

    p:(B,P,H), q:(B,Q,H), masks:(B,P)/(B,Q) in {0,1}.  Returns (p_tilde,
    q_tilde) in `out_dtype` (bf16 by default to halve writeback; accumulation
    is f32 throughout).  `bias` is accepted for API parity but cancels under
    both softmaxes, so the forward output does not depend on it.
    """
    del bias  # shift-invariant under both softmaxes -> no effect on outputs
    B, P, H = p.shape
    Q = q.shape[1]
    f32 = jnp.float32
    bf16 = jnp.bfloat16

    # Lane/sublane-aligned padding: H and Q to multiples of 128 (lane-dense
    # MXU operands / question-axis logits), P to a multiple of 8.
    Pp = _round_up(P, 8)
    Qp = _round_up(Q, 128)
    Hp = _round_up(H, 128)

    kind = _tpu_kind()
    # bf16 exponentials only where the EUP has a fast bf16 path (v6e / v7x).
    use_bf16_exp = not any(v in kind for v in ("v2", "v3", "v4", "v5"))

    out_bytes = jnp.dtype(out_dtype).itemsize

    # Generation-aware VMEM budgeting (v7x: 64 MiB/TC, v5e/v6e: 128 MiB).
    vmem_cap = _tpu_vmem_capacity_bytes()
    sizing_budget = int(vmem_cap * 0.40)
    vmem_limit = min(int(vmem_cap * 0.60), 100 * 1024 * 1024)

    # Per-batch-element VMEM footprint: double-buffered inputs AND outputs at
    # their real element sizes, plus f32 matmul/softmax temporaries.
    per_b = (2 * ((Pp + Qp) * Hp * 2             # bf16 p/q inputs (x2 buffers)
                  + (Pp + Qp) * Hp * out_bytes   # pt/qt outputs (x2 buffers)
                  + (Pp + Qp) * 4)               # masks (x2 buffers)
             + 6 * (Pp + Qp) * Hp                # f32 upcasts / accumulators
             + 24 * Pp * Qp)                     # logit / exp temporaries

    if batch_block is None:
        max_bt_vmem = max(1, sizing_budget // max(per_b, 1))
        # Keep >= 4 grid steps when B allows (>= 2 per TensorCore on v7x).
        min_steps = 4 if B >= 4 else min(B, 2)
        bt_cap = max(1, min(B, max_bt_vmem, B // max(min_steps, 1)))
        # Largest block that divides B exactly -> no wasted padded batches.
        Bt = max(d for d in range(1, bt_cap + 1) if B % d == 0)
    else:
        Bt = max(1, int(batch_block))
    Bp = _round_up(B, Bt)

    # Single padding/cast pass (skipped when shapes/dtypes are already aligned).
    p_in = _pad_to(p.astype(bf16), (Bp, Pp, Hp))
    q_in = _pad_to(q.astype(bf16), (Bp, Qp, Hp))
    pm = _pad_to(p_mask.astype(f32).reshape(B, 1, P), (Bp, 1, Pp))
    qm = _pad_to(q_mask.astype(f32).reshape(B, 1, Q), (Bp, 1, Qp))
    pw = _pad_to(jnp.asarray(p_weight, f32).reshape(1, 1, H), (1, 1, Hp))
    qw = _pad_to(jnp.asarray(q_weight, f32).reshape(1, 1, H), (1, 1, Hp))
    cqw = _pad_to(jnp.asarray(cq_weight, f32).reshape(1, 1, H), (1, 1, Hp))

    grid = (Bp // Bt,)
    grid_spec = pltpu.PrefetchScalarGridSpec(
        num_scalar_prefetch=0,
        grid=grid,
        in_specs=[
            pl.BlockSpec((Bt, Pp, Hp), lambda b: (b, 0, 0)),
            pl.BlockSpec((Bt, Qp, Hp), lambda b: (b, 0, 0)),
            pl.BlockSpec((Bt, 1, Pp), lambda b: (b, 0, 0)),
            pl.BlockSpec((Bt, 1, Qp), lambda b: (b, 0, 0)),
            pl.BlockSpec((1, 1, Hp), lambda b: (0, 0, 0)),
            pl.BlockSpec((1, 1, Hp), lambda b: (0, 0, 0)),
            pl.BlockSpec((1, 1, Hp), lambda b: (0, 0, 0)),
        ],
        out_specs=[
            pl.BlockSpec((Bt, Pp, Hp), lambda b: (b, 0, 0)),
            pl.BlockSpec((Bt, Qp, Hp), lambda b: (b, 0, 0)),
        ],
    )

    cost = pl.CostEstimate(
        flops=8 * Bp * Pp * Qp * Hp + 12 * Bp * Pp * Qp,
        transcendentals=2 * Bp * Pp * Qp,
        bytes_accessed=(Bp * (Pp + Qp) * Hp * 2            # bf16 inputs
                        + Bp * (Pp + Qp) * 4               # masks
                        + 3 * Hp * 4                       # weights
                        + Bp * (Pp + Qp) * Hp * out_bytes  # outputs
                        ),
    )

    kernel = functools.partial(aligned_attention_kernel,
                               use_bf16_exp=use_bf16_exp)

    pt, qt = pl.pallas_call(
        kernel,
        out_shape=(
            jax.ShapeDtypeStruct((Bp, Pp, Hp), out_dtype),
            jax.ShapeDtypeStruct((Bp, Qp, Hp), out_dtype),
        ),
        grid_spec=grid_spec,
        compiler_params=pltpu.CompilerParams(
            dimension_semantics=("parallel",),
            vmem_limit_bytes=vmem_limit,
        ),
        cost_estimate=cost,
    )(p_in, q_in, pm, qm, pw, qw, cqw)

    # TODO(synk): for extremely long contexts where even Bt=1 exceeds the VMEM
    # budget, a P-tile grid axis with online (flash-style) softmax over P
    # would be needed; not required at these sizes.
    return pt[:B, :P, :H], qt[:B, :Q, :H]


def xavier_uniform(key, shape):
    # torch.nn.init.xavier_uniform_ for 2D (fan_out, fan_in) / 3D tensors.
    if len(shape) == 2:
        fan_out, fan_in = shape
    else:  # (1, 1, H): receptive field folds into fans like torch does
        fan_in = shape[1] * shape[2]
        fan_out = shape[0] * shape[2]
    bound = math.sqrt(6.0 / (fan_in + fan_out))
    return jax.random.uniform(key, shape, jnp.float32, -bound, bound)


def reference(p, q, p_mask, q_mask, p_weight, q_weight, cq_weight, bias):
    """Pure-JAX reference of the PyTorch forward (eval mode, no dropout)."""
    B, P, H = p.shape
    Q = q.shape[1]
    s0 = jnp.matmul(p, p_weight)                       # (B,P,1)
    s1 = jnp.swapaxes(jnp.matmul(q, q_weight), 1, 2)   # (B,1,Q)
    s2 = jnp.matmul(p * cq_weight, jnp.swapaxes(q, 1, 2))
    s = s0 + s1 + s2 + bias                            # (B,P,Q)

    qm = q_mask.astype(jnp.float32).reshape(B, 1, Q)
    pm = p_mask.astype(jnp.float32).reshape(B, P, 1)

    l1 = qm * s + (1.0 - qm) * -1e30
    s1m = jax.nn.softmax(l1, axis=2)
    p_tilde = jnp.matmul(s1m, q)

    l2 = pm * s + (1.0 - pm) * -1e30
    s2m = jax.nn.softmax(l2, axis=1)
    q_tilde = jnp.matmul(jnp.swapaxes(s2m, 1, 2), p)
    return p_tilde, q_tilde


if __name__ == "__main__":
    B, P, Q, H = 2, 16, 8, 32
    key = jax.random.PRNGKey(0)
    kp, kq, kpw, kqw, kcq = jax.random.split(key, 5)

    p = jax.random.normal(kp, (B, P, H), jnp.float32)
    q = jax.random.normal(kq, (B, Q, H), jnp.float32)
    # masks: first few positions valid, rest padded
    p_mask = (jnp.arange(P)[None, :] < jnp.array([[P], [P - 4]])).astype(jnp.float32)
    q_mask = (jnp.arange(Q)[None, :] < jnp.array([[Q], [Q - 2]])).astype(jnp.float32)

    p_weight = xavier_uniform(kpw, (H, 1))
    q_weight = xavier_uniform(kqw, (H, 1))
    cq_weight = xavier_uniform(kcq, (1, 1, H))
    bias = jnp.zeros((1,), jnp.float32)

    # TODO(synk): dropout (drop_prob=0.1) is a no-op in eval mode and is omitted.

    pt, qt = aligned_attention(p, q, p_mask, q_mask,
                               p_weight, q_weight, cq_weight, bias)
    jax.block_until_ready((pt, qt))

    pt_ref, qt_ref = reference(p, q, p_mask, q_mask,
                               p_weight, q_weight, cq_weight, bias)
    assert pt.shape == (B, P, H) and qt.shape == (B, Q, H)

    pt_f = pt.astype(jnp.float32)
    qt_f = qt.astype(jnp.float32)
    # bf16 MXU operands / bf16 outputs (f32 accumulation) -> loose elementwise
    # tolerance plus a tight mean-error bound (logic bugs give O(1) errors,
    # bf16 rounding gives ~1e-2).
    assert jnp.allclose(pt_f, pt_ref, atol=1e-1, rtol=1e-1)
    assert jnp.allclose(qt_f, qt_ref, atol=1e-1, rtol=1e-1)
    assert float(jnp.mean(jnp.abs(pt_f - pt_ref))) < 3e-2
    assert float(jnp.mean(jnp.abs(qt_f - qt_ref))) < 3e-2
    print("KERNEL_OK")
</pallas_src>

<mosaic_0001>
module attributes {stable_mosaic.version = 11 : i64} {
  func.func @aligned_attention_kernel(%arg0: i32, %arg1: memref<1x16x128xbf16, #tpu.memory_space<vmem>>, %arg2: memref<1x128x128xbf16, #tpu.memory_space<vmem>>, %arg3: memref<1x1x16xf32, #tpu.memory_space<vmem>>, %arg4: memref<1x1x128xf32, #tpu.memory_space<vmem>>, %arg5: memref<1x1x128xf32, #tpu.memory_space<vmem>>, %arg6: memref<1x1x128xf32, #tpu.memory_space<vmem>>, %arg7: memref<1x1x128xf32, #tpu.memory_space<vmem>>, %arg8: memref<1x16x128xbf16, #tpu.memory_space<vmem>>, %arg9: memref<1x128x128xbf16, #tpu.memory_space<vmem>>) attributes {dimension_semantics = [#tpu.dimension_semantics<parallel>], iteration_bounds = array<i64: 2>, scalar_prefetch = 0 : i64, scratch_operands = 0 : i64, tpu.core_type = #tpu.core_type<tc>, window_params = [{transform_indices = @transform_0, window_bounds = array<i64: 1, 16, 128>}, {transform_indices = @transform_1, window_bounds = array<i64: 1, 128, 128>}, {transform_indices = @transform_2, window_bounds = array<i64: 1, 1, 16>}, {transform_indices = @transform_3, window_bounds = array<i64: 1, 1, 128>}, {pipeline_mode = #tpu.pipeline_mode<synchronous>, transform_indices = @transform_4, window_bounds = array<i64: 1, 1, 128>}, {pipeline_mode = #tpu.pipeline_mode<synchronous>, transform_indices = @transform_5, window_bounds = array<i64: 1, 1, 128>}, {pipeline_mode = #tpu.pipeline_mode<synchronous>, transform_indices = @transform_6, window_bounds = array<i64: 1, 1, 128>}, {transform_indices = @transform_7, window_bounds = array<i64: 1, 16, 128>}, {transform_indices = @transform_8, window_bounds = array<i64: 1, 128, 128>}]} {
    %c0 = arith.constant 0 : index
    %c0_0 = arith.constant 0 : index
    %c0_1 = arith.constant 0 : index
    %0 = vector.load %arg1[%c0, %c0_0, %c0_1] : memref<1x16x128xbf16, #tpu.memory_space<vmem>>, vector<1x16x128xbf16>
    %c0_2 = arith.constant 0 : index
    %c0_3 = arith.constant 0 : index
    %c0_4 = arith.constant 0 : index
    %1 = vector.load %arg2[%c0_2, %c0_3, %c0_4] : memref<1x128x128xbf16, #tpu.memory_space<vmem>>, vector<1x128x128xbf16>
    %c0_5 = arith.constant 0 : index
    %c0_6 = arith.constant 0 : index
    %c0_7 = arith.constant 0 : index
    %2 = vector.load %arg7[%c0_5, %c0_6, %c0_7] : memref<1x1x128xf32, #tpu.memory_space<vmem>>, vector<1x1x128xf32>
    %3 = arith.extf %1 : vector<1x128x128xbf16> to vector<1x128x128xf32>
    %4 = vector.broadcast %2 : vector<1x1x128xf32> to vector<1x128x128xf32>
    %5 = arith.mulf %3, %4 : vector<1x128x128xf32>
    %6 = arith.truncf %5 : vector<1x128x128xf32> to vector<1x128x128xbf16>
    %7 = arith.extf %0 : vector<1x16x128xbf16> to vector<1x16x128xf32>
    %c0_8 = arith.constant 0 : index
    %c0_9 = arith.constant 0 : index
    %c0_10 = arith.constant 0 : index
    %8 = vector.load %arg5[%c0_8, %c0_9, %c0_10] : memref<1x1x128xf32, #tpu.memory_space<vmem>>, vector<1x1x128xf32>
    %9 = vector.broadcast %8 : vector<1x1x128xf32> to vector<1x16x128xf32>
    %10 = arith.mulf %7, %9 : vector<1x16x128xf32>
    %cst = arith.constant dense<0.000000e+00> : vector<1x16xf32>
    %11 = vector.multi_reduction <add>, %10, %cst [2] : vector<1x16x128xf32> to vector<1x16xf32>
    %12 = vector.shape_cast %11 : vector<1x16xf32> to vector<1x1x16xf32>
    %13 = arith.extf %1 : vector<1x128x128xbf16> to vector<1x128x128xf32>
    %c0_11 = arith.constant 0 : index
    %c0_12 = arith.constant 0 : index
    %c0_13 = arith.constant 0 : index
    %14 = vector.load %arg6[%c0_11, %c0_12, %c0_13] : memref<1x1x128xf32, #tpu.memory_space<vmem>>, vector<1x1x128xf32>
    %15 = vector.broadcast %14 : vector<1x1x128xf32> to vector<1x128x128xf32>
    %16 = arith.mulf %13, %15 : vector<1x128x128xf32>
    %cst_14 = arith.constant dense<0.000000e+00> : vector<1x128xf32>
    %17 = vector.multi_reduction <add>, %16, %cst_14 [2] : vector<1x128x128xf32> to vector<1x128xf32>
    %18 = vector.shape_cast %17 : vector<1x128xf32> to vector<1x1x128xf32>
    %c0_15 = arith.constant 0 : index
    %c0_16 = arith.constant 0 : index
    %c0_17 = arith.constant 0 : index
    %19 = vector.load %arg4[%c0_15, %c0_16, %c0_17] : memref<1x1x128xf32, #tpu.memory_space<vmem>>, vector<1x1x128xf32>
    %cst_18 = arith.constant 1.000000e+00 : f32
    %20 = vector.broadcast %cst_18 : f32 to vector<1x1x128xf32>
    %21 = arith.subf %20, %19 : vector<1x1x128xf32>
    %cst_19 = arith.constant -1.000000e+30 : f32
    %22 = vector.broadcast %cst_19 : f32 to vector<1x1x128xf32>
    %23 = arith.mulf %21, %22 : vector<1x1x128xf32>
    %24 = arith.addf %18, %23 : vector<1x1x128xf32>
    %c0_20 = arith.constant 0 : index
    %c0_21 = arith.constant 0 : index
    %c0_22 = arith.constant 0 : index
    %25 = vector.load %arg3[%c0_20, %c0_21, %c0_22] : memref<1x1x16xf32, #tpu.memory_space<vmem>>, vector<1x1x16xf32>
    %cst_23 = arith.constant 1.000000e+00 : f32
    %26 = vector.broadcast %cst_23 : f32 to vector<1x1x16xf32>
    %27 = arith.subf %26, %25 : vector<1x1x16xf32>
    %cst_24 = arith.constant -1.000000e+30 : f32
    %28 = vector.broadcast %cst_24 : f32 to vector<1x1x16xf32>
    %29 = arith.mulf %27, %28 : vector<1x1x16xf32>
    %30 = arith.addf %12, %29 : vector<1x1x16xf32>
    "tpu.trace_start"() <{level = 10 : i32, message = "bph,bqh->bpq"}> : () -> ()
    %cst_25 = arith.constant dense<0.000000e+00> : vector<1x16x128xf32>
    %31 = tpu.matmul %0, %6, %cst_25 {dimension_numbers = #tpu.dot_dimension_numbers<[2], [2], [1], [1], [0, 0, 0, 1, 1, 1], [0], [0]>} : vector<1x16x128xbf16>, vector<1x128x128xbf16>, vector<1x16x128xf32> -> vector<1x16x128xf32>
    "tpu.trace_stop"() : () -> ()
    %32 = vector.broadcast %24 : vector<1x1x128xf32> to vector<1x16x128xf32>
    %33 = arith.addf %31, %32 : vector<1x16x128xf32>
    %cst_26 = arith.constant dense<0xFF800000> : vector<1x16xf32>
    %34 = vector.multi_reduction <maximumf>, %33, %cst_26 [2] : vector<1x16x128xf32> to vector<1x16xf32>
    %35 = vector.shape_cast %34 : vector<1x16xf32> to vector<1x16x1xf32>
    %36 = vector.broadcast %35 : vector<1x16x1xf32> to vector<1x16x128xf32>
    %37 = arith.subf %33, %36 : vector<1x16x128xf32>
    %38 = arith.truncf %37 : vector<1x16x128xf32> to vector<1x16x128xbf16>
    %39 = math.exp %38 : vector<1x16x128xbf16>
    %40 = arith.extf %39 : vector<1x16x128xbf16> to vector<1x16x128xf32>
    %cst_27 = arith.constant dense<0.000000e+00> : vector<1x16xf32>
    %41 = vector.multi_reduction <add>, %40, %cst_27 [2] : vector<1x16x128xf32> to vector<1x16xf32>
    %42 = vector.shape_cast %41 : vector<1x16xf32> to vector<1x16x1xf32>
    %43 = tpu.reciprocal %42 {approx = true} : vector<1x16x1xf32> -> vector<1x16x1xf32>
    "tpu.trace_start"() <{level = 10 : i32, message = "bpq,bqh->bph"}> : () -> ()
    %cst_28 = arith.constant dense<0.000000e+00> : vector<1x16x128xf32>
    %44 = tpu.matmul %39, %1, %cst_28 {dimension_numbers = #tpu.dot_dimension_numbers<[2], [1], [1], [2], [0, 0, 0, 1, 1, 2], [0], [0]>} : vector<1x16x128xbf16>, vector<1x128x128xbf16>, vector<1x16x128xf32> -> vector<1x16x128xf32>
    "tpu.trace_stop"() : () -> ()
    %45 = vector.broadcast %43 : vector<1x16x1xf32> to vector<1x16x128xf32>
    %46 = arith.mulf %44, %45 : vector<1x16x128xf32>
    %47 = arith.truncf %46 : vector<1x16x128xf32> to vector<1x16x128xbf16>
    %c0_29 = arith.constant 0 : index
    %c0_30 = arith.constant 0 : index
    %c0_31 = arith.constant 0 : index
    %48 = vector.load %arg8[%c0_29, %c0_30, %c0_31] : memref<1x16x128xbf16, #tpu.memory_space<vmem>>, vector<1x16x128xbf16>
    tpu.vector_store %arg8[%c0_29, %c0_30, %c0_31], %47 {strides = array<i32>} : memref<1x16x128xbf16, #tpu.memory_space<vmem>>, vector<1x16x128xbf16>,
    "tpu.trace_start"() <{level = 10 : i32, message = "bqh,bph->bqp"}> : () -> ()
    %cst_32 = arith.constant dense<0.000000e+00> : vector<1x128x16xf32>
    %49 = tpu.matmul %6, %0, %cst_32 {dimension_numbers = #tpu.dot_dimension_numbers<[2], [2], [1], [1], [0, 0, 0, 1, 1, 1], [0], [0]>} : vector<1x128x128xbf16>, vector<1x16x128xbf16>, vector<1x128x16xf32> -> vector<1x128x16xf32>
    "tpu.trace_stop"() : () -> ()
    %50 = vector.broadcast %30 : vector<1x1x16xf32> to vector<1x128x16xf32>
    %51 = arith.addf %49, %50 : vector<1x128x16xf32>
    %cst_33 = arith.constant dense<0xFF800000> : vector<1x128xf32>
    %52 = vector.multi_reduction <maximumf>, %51, %cst_33 [2] : vector<1x128x16xf32> to vector<1x128xf32>
    %53 = vector.shape_cast %52 : vector<1x128xf32> to vector<1x128x1xf32>
    %54 = vector.broadcast %53 : vector<1x128x1xf32> to vector<1x128x16xf32>
    %55 = arith.subf %51, %54 : vector<1x128x16xf32>
    %56 = arith.truncf %55 : vector<1x128x16xf32> to vector<1x128x16xbf16>
    %57 = math.exp %56 : vector<1x128x16xbf16>
    %58 = arith.extf %57 : vector<1x128x16xbf16> to vector<1x128x16xf32>
    %cst_34 = arith.constant dense<0.000000e+00> : vector<1x128xf32>
    %59 = vector.multi_reduction <add>, %58, %cst_34 [2] : vector<1x128x16xf32> to vector<1x128xf32>
    %60 = vector.shape_cast %59 : vector<1x128xf32> to vector<1x128x1xf32>
    %61 = tpu.reciprocal %60 {approx = true} : vector<1x128x1xf32> -> vector<1x128x1xf32>
    %62 = arith.extf %57 : vector<1x128x16xbf16> to vector<1x128x16xf32>
    %63 = vector.broadcast %61 : vector<1x128x1xf32> to vector<1x128x16xf32>
    %64 = arith.mulf %62, %63 : vector<1x128x16xf32>
    %65 = arith.truncf %64 : vector<1x128x16xf32> to vector<1x128x16xbf16>
    "tpu.trace_start"() <{level = 10 : i32, message = "bqp,bph->bqh"}> : () -> ()
    %cst_35 = arith.constant dense<0.000000e+00> : vector<1x128x128xf32>
    %66 = tpu.matmul %65, %0, %cst_35 {dimension_numbers = #tpu.dot_dimension_numbers<[2], [1], [1], [2], [0, 0, 0, 1, 1, 2], [0], [0]>} : vector<1x128x16xbf16>, vector<1x16x128xbf16>, vector<1x128x128xf32> -> vector<1x128x128xf32>
    "tpu.trace_stop"() : () -> ()
    %67 = arith.truncf %66 : vector<1x128x128xf32> to vector<1x128x128xbf16>
    %c0_36 = arith.constant 0 : index
    %c0_37 = arith.constant 0 : index
    %c0_38 = arith.constant 0 : index
    %68 = vector.load %arg9[%c0_36, %c0_37, %c0_38] : memref<1x128x128xbf16, #tpu.memory_space<vmem>>, vector<1x128x128xbf16>
    tpu.vector_store %arg9[%c0_36, %c0_37, %c0_38], %67 {strides = array<i32>} : memref<1x128x128xbf16, #tpu.memory_space<vmem>>, vector<1x128x128xbf16>,
    return
  }
  func.func @transform_0(%arg0: i32) -> (i32, i32, i32) {
    %c0_i32 = arith.constant 0 : i32
    %c0_i32_0 = arith.constant 0 : i32
    %c0_i32_1 = arith.constant 0 : i32
    return %arg0, %c0_i32, %c0_i32_0 : i32, i32, i32
  }
  func.func @transform_1(%arg0: i32) -> (i32, i32, i32) {
    %c0_i32 = arith.constant 0 : i32
    %c0_i32_0 = arith.constant 0 : i32
    %c0_i32_1 = arith.constant 0 : i32
    return %arg0, %c0_i32, %c0_i32_0 : i32, i32, i32
  }
  func.func @transform_2(%arg0: i32) -> (i32, i32, i32) {
    %c0_i32 = arith.constant 0 : i32
    %c0_i32_0 = arith.constant 0 : i32
    %c0_i32_1 = arith.constant 0 : i32
    return %arg0, %c0_i32, %c0_i32_0 : i32, i32, i32
  }
  func.func @transform_3(%arg0: i32) -> (i32, i32, i32) {
    %c0_i32 = arith.constant 0 : i32
    %c0_i32_0 = arith.constant 0 : i32
    %c0_i32_1 = arith.constant 0 : i32
    return %arg0, %c0_i32, %c0_i32_0 : i32, i32, i32
  }
  func.func @transform_4(%arg0: i32) -> (i32, i32, i32) {
    %c0_i32 = arith.constant 0 : i32
    %c0_i32_0 = arith.constant 0 : i32
    %c0_i32_1 = arith.constant 0 : i32
    %c0_i32_2 = arith.constant 0 : i32
    return %c0_i32, %c0_i32_0, %c0_i32_1 : i32, i32, i32
  }
  func.func @transform_5(%arg0: i32) -> (i32, i32, i32) {
    %c0_i32 = arith.constant 0 : i32
    %c0_i32_0 = arith.constant 0 : i32
    %c0_i32_1 = arith.constant 0 : i32
    %c0_i32_2 = arith.constant 0 : i32
    return %c0_i32, %c0_i32_0, %c0_i32_1 : i32, i32, i32
  }
  func.func @transform_6(%arg0: i32) -> (i32, i32, i32) {
    %c0_i32 = arith.constant 0 : i32
    %c0_i32_0 = arith.constant 0 : i32
    %c0_i32_1 = arith.constant 0 : i32
    %c0_i32_2 = arith.constant 0 : i32
    return %c0_i32, %c0_i32_0, %c0_i32_1 : i32, i32, i32
  }
  func.func @transform_7(%arg0: i32) -> (i32, i32, i32) {
    %c0_i32 = arith.constant 0 : i32
    %c0_i32_0 = arith.constant 0 : i32
    %c0_i32_1 = arith.constant 0 : i32
    return %arg0, %c0_i32, %c0_i32_0 : i32, i32, i32
  }
  func.func @transform_8(%arg0: i32) -> (i32, i32, i32) {
    %c0_i32 = arith.constant 0 : i32
    %c0_i32_0 = arith.constant 0 : i32
    %c0_i32_1 = arith.constant 0 : i32
    return %arg0, %c0_i32, %c0_i32_0 : i32, i32, i32
  }
}

</mosaic_0001>

<bundles_post_ra>
// kernel: tpu_custom_call.1
= control target key start
LH: loop header
LB: loop body
LE: loop exit
PB: predicated region body
PF: predicated region fallthrough
CT: control target
= control target key end

     0   :  { %s3032_s0 = inlined_call_operand.hbm [shape: bf16[2,16,128], index: 0, kind: input, shape index: {}]   ;;  %s3033_s1 = inlined_call_operand.hbm [shape: bf16[2,128,128], index: 1, kind: input, shape index: {}]   ;;  %s3034_s2 = inlined_call_operand.vmem [shape: f32[2,1,16], index: 2, kind: input, shape index: {}]   ;;  %s3035_s3 = inlined_call_operand.vmem [shape: f32[2,1,128], index: 3, kind: input, shape index: {}]   ;;  %s3036_s4 = inlined_call_operand.vmem [shape: f32[1,1,128], index: 4, kind: input, shape index: {}]   ;;  %s3037_s5 = inlined_call_operand.vmem [shape: f32[1,1,128], index: 5, kind: input, shape index: {}]   ;;  %s3038_s6 = inlined_call_operand.vmem [shape: f32[1,1,128], index: 6, kind: input, shape index: {}]   ;;  %s3039_s7 = inlined_call_operand.hbm [shape: bf16[2,16,128], index: 7, kind: output, shape index: {0}]   ;;  %s3040_s8 = inlined_call_operand.hbm [shape: bf16[2,128,128], index: 8, kind: output, shape index: {1}]  }
   0x1   :  { %3044 = sst [smem:[#allocation16_spill]] %s3032_s0 }
   0x2   :  { %14 = vsyncpa [#allocation3], 0 }
   0x3   :  { %16 = vsyncpa [#allocation3 + $0x1], 0 }
   0x4   :  { %17 = vsyncpa [#allocation6], 0 }
   0x5   :  { %19 = vsyncpa [#allocation6 + $0x1], 0 }
   0x6   :  { %20 = vsyncpa [#allocation4], 0 }
   0x7   :  { %22 = vsyncpa [#allocation4 + $0x1], 0 }
   0x8   :  { %23 = vsyncpa [#allocation9], 0 }
   0x9   :  { %25 = vsyncpa [#allocation9 + $0x1], 0  ;;  %s2324_s27 = smov 0   ;;  %s2326_s28 = smov 0  }
   0xa   :  { %s2328_s29 = smov 0   ;;  %s2330_s30 = smov 0  }
   0xb LB: > { %3045 = sst [smem:[#allocation14_spill]] %s2262_s29  ;;  %s2345_s9 = sadd.s32 4294967295, %s2266_s30   ;;  %s2266_s30 = sphi %s2330_s30, %s3062_s30   ;;  %s2262_s29 = sphi %s2328_s29, %s3059_s29   ;;  %s2258_s28 = sphi %s2326_s28, %s3061_s28   ;;  %s2254_s27 = sphi %s2324_s27, %s3060_s27  }
   0xc   : > { %s1719_s10 = sadd.s32 4294967294, %s2266_s30   ;;  %s2349_s11 = sadd.s32 1, %s2266_s30  }
   0xd   : > { %s38_s12 = sadd.s32 1, %s2262_s29  ;;  %s35_s13 = ssub.s32 %s2266_s30, %s2349_s11 }
   0xe   : > { %p45_p0 = scmp.ne.s32.totalorder %s2262_s29, %s2258_s28  ;;  %p36_p1 = scmp.eq.s32.totalorder %s35_s13, 0 }
   0xf   : > { %p46_p2 = scmp.eq.s32.totalorder %s2266_s30, 0  ;;  %p51_p3 = scmp.ne.s32.totalorder %s2258_s28, %s2254_s27 }
  0x10   : > { %p52_p4 = scmp.eq.s32.totalorder %s2345_s9, 0  ;;  %p216_p7 = scmp.eq.s32.totalorder %s2345_s9, 1 }
  0x11   : > { %s2361_s14 = scalar_select %p36_p1, %s2262_s29, %s38_s12  }
  0x12   : > { %p2363_p5 = por %p46_p2, %p45_p0  ;;  %p2367_p6 = por %p52_p4, %p51_p3 }
  0x13   : > { %3046 = sst [smem:[#allocation15_spill]] %s2361_s14  ;;  %p222_p8 = scmp.eq.s32.totalorder %s1719_s10, 1 }
  0x14   : > { %s3048_s16 = scalar_select %p2367_p6, 1, 0 }
  0x15   : > { %p1989_p10 = scmp.lt.s32.totalorder %s2266_s30, 2  ;;  %p2374_p11 = por %p216_p7, %p45_p0 }
  0x16   : > { %p2378_p12 = por %p222_p8, %p51_p3  ;;  %s2383_s19 = sand.u32 1, %s2262_s29  }
  0x17   : > { %s3049_s17 = scalar_select %p2374_p11, 1, 0 }
  0x18   : > { %s3050_s18 = scalar_select %p2378_p12, 1, 0 }
  0x19   : > { %s1779_s20 = sshll.u32 %s2266_s30, 7  ;;  %s1722_s21 = sshll.u32 %s2383_s19, 3 }
  0x1a   : > { %s3051_s0 = sld [smem:[#allocation16_spill]]  ;;  %s281_s25 = scalar_lea.vmem [#allocation2], %s1722_s21 }
  0x1b   : > { %s288_s26 = sshll.u32 %s281_s25, 4  ;;  %p2394_p13 = pnand %p1989_p10, %p2363_p5  ;;  %s2398_s26 = int_to_ptr.vmem [resolvable:$true] %s288_s26 }
  0x1c   : > { %s278_s12 = scalar_lea.sflag [#allocation3], %s2383_s19 }
  0x1d   : > { %p2106_p1 = pneg %p2394_p13 }
  0x20   : > { %s2390_s24 = scalar_lea.hbm %s3051_s0, %s1779_s20  ;;  %s2109_s15 = scalar_lea.hbm %s3051_s0, 256 }
  0x21   : > { %s2104_s13 = scalar_lea.hbm %s2390_s24, 128  ;;  %p2110_p4 = scmp.lt.u32.totalorder %s2390_s24, %s3051_s0 }
  0x22   : > { %p2105_p0 = scmp.ne.s32.totalorder %s2390_s24, %s2104_s13  ;;  %p2111_p5 = scmp.lt.u32.totalorder %s2109_s15, %s2104_s13 }
  0x23   : > { %p2113_p8 = scmp.lt.u32.totalorder %s2104_s13, %s2390_s24 }
  0x24   : > { %p2107_p2 = pnand %p2106_p1, %p2105_p0  ;;  %p2112_p7 = por %p2111_p5, %p2110_p4 }
  0x26   : > { %p2108_p3 = pneg %p2107_p2  ;;  %p2114_p10 = por %p2113_p8, %p2112_p7 }
  0x28   : > { %p2115_p9 = pnand %p2114_p10, %p2108_p3 }
  0x2a   : > { %2118 = shalt.err (!%p2115_p9)
}
  0x2b   : > { %s2119_s25 = scalar_lea.vmem %s2398_s26, 128  ;;  %s2268_s20 = smov [#allocation2]  }
  0x2c   : > { %p2120_p0 = scmp.ne.s32.totalorder %s2398_s26, %s2119_s25  ;;  %s2124_s21 = sshll.u32 %s2268_s20, 4  ;;  %s2125_s21 = int_to_ptr.vmem [resolvable:$false] %s2124_s21 }
  0x2d   : > { %s2126_s22 = scalar_lea.vmem %s2125_s21, 256  ;;  %p2127_p11 = scmp.lt.s32.totalorder %s2398_s26, %s2125_s21 }
  0x2e   : > { %p2122_p2 = pnand %p2120_p0, %p2106_p1  ;;  %p2128_p4 = scmp.lt.s32.totalorder %s2126_s22, %s2119_s25 }
  0x30   : > { %p2123_p12 = pneg %p2122_p2  ;;  %p2129_p5 = por %p2128_p4, %p2127_p11 }
  0x32   : > { %p2130_p7 = pnand %p2129_p5, %p2123_p12 }
  0x34   : > { %2133 = shalt.err (!%p2130_p7)
}
  0x35   : > { %s2269_s13 = smov 64   ;;  %s2270_s15 = smov 4  }
  0x36   : > { %1978 = dma.hbm_to_vmem [thread:$0]  (!%p2394_p13), %s2390_s24, 128, %s2398_s26, %s278_s12, %s2269_s13, %s2269_s13, %s2270_s15  }
  0x37   : > { %p1728_p9 = scmp.ge.s32.totalorder %s2266_s30, 1  ;;  %p329_p11 = scmp.lt.s32.totalorder %s2266_s30, 3 }
  0x38   : > { %s1725_s23 = sshll.u32 %s2383_s19, 6  ;;  %s1780_s20 = sshll.u32 %s2266_s30, 10 }
  0x39   : > { %p2434_p12 = pnand %p1728_p9, %p329_p11  ;;  %s302_s21 = scalar_lea.vmem [#allocation5], %s1725_s23 }
  0x3a   : > { %s309_s22 = sshll.u32 %s302_s21, 4  ;;  %s2442_s29 = scalar_lea.hbm %s3033_s1, %s1780_s20  ;;  %s2444_s22 = int_to_ptr.vmem [resolvable:$true] %s309_s22 }
  0x3b   : > { %s299_s24 = scalar_lea.sflag [#allocation6], %s2383_s19  ;;  %s2134_s26 = scalar_lea.hbm %s2442_s29, 1024 }
  0x3c   : > { %p2135_p3 = scmp.ne.s32.totalorder %s2442_s29, %s2134_s26  ;;  %s2139_s21 = scalar_lea.hbm %s3033_s1, 2048 }
  0x3d   : > { %p2140_p0 = scmp.lt.u32.totalorder %s2442_s29, %s3033_s1  ;;  %p2141_p2 = scmp.lt.u32.totalorder %s2139_s21, %s2134_s26 }
  0x3e   : > { %p2137_p8 = pnand %p2135_p3, %p2106_p1  ;;  %p2143_p5 = scmp.lt.u32.totalorder %s2134_s26, %s2442_s29 }
  0x3f   : > { %p2142_p4 = por %p2141_p2, %p2140_p0 }
  0x40   : > { %p2138_p10 = pneg %p2137_p8 }
  0x41   : > { %p2144_p7 = por %p2143_p5, %p2142_p4 }
  0x43   : > { %p2145_p9 = pnand %p2144_p7, %p2138_p10 }
  0x45   : > { %2148 = shalt.err (!%p2145_p9)
}
  0x46   : > { %s2149_s20 = scalar_lea.vmem %s2444_s22, 1024  ;;  %s2271_s12 = smov [#allocation5]  }
  0x47   : > { %p2150_p11 = scmp.ne.s32.totalorder %s2444_s22, %s2149_s20  ;;  %s2154_s23 = sshll.u32 %s2271_s12, 4  ;;  %s2155_s23 = int_to_ptr.vmem [resolvable:$false] %s2154_s23 }
  0x48   : > { %s2156_s0 = scalar_lea.vmem %s2155_s23, 2048  ;;  %p2157_p6 = scmp.lt.s32.totalorder %s2444_s22, %s2155_s23 }
  0x49   : > { %p2152_p3 = pnand %p2150_p11, %p2106_p1  ;;  %p2158_p0 = scmp.lt.s32.totalorder %s2156_s0, %s2149_s20 }
  0x4b   : > { %p2153_p8 = pneg %p2152_p3  ;;  %p2159_p2 = por %p2158_p0, %p2157_p6 }
  0x4d   : > { %p2160_p4 = pnand %p2159_p2, %p2153_p8 }
  0x4f   : > { %2163 = shalt.err (!%p2160_p4)
}
  0x50   : > { %1981 = dma.hbm_to_vmem [thread:$0]  (!%p2394_p13), %s2442_s29, 1024, %s2444_s22, %s299_s24, %s2269_s13, %s2269_s13, %s2270_s15  }
  0x51   : > { %333 = sbr.rel (%p2434_p12) target bundleno = 1410 (0x582), region = 48  ;;  %s2478_s26 = sand.u32 (!%p2434_p12), 1, %s2258_s28  }
  0x52   : > { %s1729_s21 = sshll.u32 (!%p2434_p12), %s2478_s26, 3  ;;  %s336_s10 = scalar_lea.sflag (!%p2434_p12), [#allocation3], %s2478_s26 }
  0x53   : > { %s2484_s14 = scalar_lea.vmem (!%p2434_p12), [#allocation2], %s1729_s21  ;;  %p3054_p6 = scmp.ne.s32.totalorder (!%p2434_p12), %s3048_s16, 0 }
  0x58   : > { %2237 = dma.done.wait (%p3054_p6), %s336_s10, 128  }
  0x59   : > { %2239 = vsyncadd (%p3054_p6), %s336_s10, 4294967168  ;;  %s1730_s29 = sshll.u32 %s2478_s26, 6  ;;  %s345_s19 = scalar_lea.sflag [#allocation6], %s2478_s26 }
  0x5a   : > { %s2494_s13 = scalar_lea.vmem [#allocation5], %s1730_s29 }
  0x5b   : > { %2241 = dma.done.wait (%p3054_p6), %s345_s19, 1024  }
  0x5c   : > { %2243 = vsyncadd (%p3054_p6), %s345_s19, 4294966272  ;;  %v2272_v0 = vmov 0.0   ;;  %vm2273_vm0 = vmmov 0   ;;  %v2505_v1 = vld [vmem:[%s2494_s13 + $0x8] sm:$0xff]   ;;  %v2510_v2 = vld [vmem:[%s3037_s5] ss:$0 sm:$0xff]  ;;  %v543_v54 = vlaneseq }
  0x5d   : > { %1889 = vmatprep.subr.bf16.mxu0 %v2272_v0  ;;  %1905 = vmatprep.mubr.msk.bf16.mxu0 %vm2273_vm0, %v2272_v0  ;;  %v425_v3 = vunpack.c.l.bf16 %v2505_v1  ;;  %v2514_v4 = vld [vmem:[%s2494_s13] sm:$0xff]   ;;  %v426_v5 = vunpack.c.h.bf16 %v2505_v1  ;;  %v2520_v8 = vld [vmem:[%s2494_s13 + $0x10] sm:$0xff]   ;;  %v2529_v15 = vld [vmem:[%s2494_s13 + $0x18] sm:$0xff]   ;;  %p397_p13 = scmp.lt.s32.totalorder %s2345_s9, 1  ;;  %vm742_vm1 = vcmask 130112   ;;  %vm749_vm2 = vcmask 195712  }
  0x5e   : > { %1909 = vmatprep.subr.bf16.mxu1 %v2272_v0  ;;  %1925 = vmatprep.mubr.msk.bf16.mxu1 %vm2273_vm0, %v2272_v0  ;;  %v423_v6 = vunpack.c.l.bf16 %v2514_v4  ;;  %v424_v7 = vunpack.c.h.bf16 %v2514_v4  ;;  %v428_v12 = vunpack.c.h.bf16 %v2520_v8  ;;  %v427_v14 = vunpack.c.l.bf16 %v2520_v8  ;;  %v2534_v16 = vld [vmem:[%s3038_s6] ss:$0 sm:$0xff]  ;;  %v2541_v21 = vld [vmem:[%s2494_s13 + $0x20] sm:$0xff]   ;;  %v2550_v28 = vld [vmem:[%s2494_s13 + $0x28] sm:$0xff]   ;;  %s389_s15 = scalar_lea.vmem [#allocation7], %s1729_s21  ;;  %s1799_s25 = sshll.u32 %s2345_s9, 7 }
  0x5f   : > { %v493_v9 = vmul.f32 %v2510_v2, %v425_v3  ;;  %v494_v11 = vmul.f32 %v2510_v2, %v426_v5  ;;  %v430_v18 = vunpack.c.h.bf16 %v2529_v15  ;;  %v429_v20 = vunpack.c.l.bf16 %v2529_v15  ;;  %v2563_v36 = vld [vmem:[%s2494_s13 + $0x30] sm:$0xff]   ;;  %v2572_v42 = vld [vmem:[%s2494_s13 + $0x38] sm:$0xff]   ;;  %s2584_s24 = scalar_select %p397_p13, %s2345_s9, 1  ;;  %1910 = vmatpush3.bf16.msra.mxu1 %v2514_v4 }
  0x60   : > { %v491_v10 = vmul.f32 %v2510_v2, %v423_v6  ;;  %v492_v13 = vmul.f32 %v2510_v2, %v424_v7  ;;  %v496_v17 = vmul.f32 %v2510_v2, %v428_v12  ;;  %v495_v19 = vmul.f32 %v2510_v2, %v427_v14  ;;  %1911 = vmatprep.subr.bf16.mxu1 %v2272_v0  ;;  %s1557_s16 = sshll.u32 %s389_s15, 4  ;;  %s2935_s20 = scalar_lea.hbm %s3039_s7, %s1799_s25  ;;  %s2937_s16 = int_to_ptr.vmem [resolvable:$true] %s1557_s16 }
  0x61   : > { %511 = vadd.xlane.f32.xlu1 %v493_v9  ;;  %v445_v22 = vmul.f32 %v2534_v16, %v423_v6  ;;  %v446_v23 = vmul.f32 %v2534_v16, %v424_v7  ;;  %v498_v24 = vmul.f32 %v2510_v2, %v430_v18  ;;  %v432_v25 = vunpack.c.h.bf16 %v2541_v21  ;;  %s402_s23 = scalar_lea.vmem %s3035_s3, %s2584_s24  ;;  %s399_s13 = scalar_lea.vmem %s3034_s2, %s2584_s24 }
  0x62   : > { %507 = vadd.xlane.f32.xlu0 %v491_v10  ;;  %v497_v26 = vmul.f32 %v2510_v2, %v429_v20  ;;  %v431_v27 = vunpack.c.l.bf16 %v2541_v21  ;;  %v447_v30 = vmul.f32 %v2534_v16, %v425_v3  ;;  %v448_v31 = vmul.f32 %v2534_v16, %v426_v5  ;;  %v539_v55 = vld [vmem:[%s402_s23] sm:$0x1]  ;;  %s1539_s12 = scalar_lea.sflag [#allocation4], %s2478_s26  ;;  %s2164_s23 = scalar_lea.vmem %s2937_s16, 128 }
  0x63   : > { %v2552_v29 = vpack.c.bf16 %v446_v23, %v445_v22  ;;  %v500_v32 = vmul.f32 %v2510_v2, %v432_v25  ;;  %v434_v33 = vunpack.c.h.bf16 %v2550_v28  ;;  %v433_v35 = vunpack.c.l.bf16 %v2550_v28  ;;  %1912 = vmatpush3.bf16.msra.mxu1 %v2505_v1  ;;  %p2165_p1 = scmp.ne.s32.totalorder %s2937_s16, %s2164_s23  ;;  %p3055_p12 = scmp.ne.s32.totalorder %s3049_s17, 0 }
  0x64   : > { %v499_v34 = vmul.f32 %v2510_v2, %v431_v27  ;;  %v2565_v37 = vpack.c.bf16 %v448_v31, %v447_v30  ;;  %v436_v39 = vunpack.c.h.bf16 %v2563_v36  ;;  %v435_v41 = vunpack.c.l.bf16 %v2563_v36  ;;  %1913 = vmatprep.subr.bf16.mxu1 %v2272_v0  ;;  %s2275_s21 = smov [#allocation7]  }
  0x65   : > { %513 = vadd.xlane.f32.xlu1 %v494_v11  ;;  %1890 = vmatpush3.bf16.xpose.msra.mxu0 %v2552_v29  ;;  %v502_v38 = vmul.f32 %v2510_v2, %v434_v33  ;;  %v501_v40 = vmul.f32 %v2510_v2, %v433_v35  ;;  %v450_v43 = vmul.f32 %v2534_v16, %v428_v12  ;;  %v438_v46 = vunpack.c.h.bf16 %v2572_v42  ;;  %p2166_p10 = pnand %p2165_p1, %p3055_p12  ;;  %s2168_s0 = sshll.u32 %s2275_s21, 4  ;;  %s2169_s0 = int_to_ptr.vmem [resolvable:$false] %s2168_s0 }
  0x66   : > { %509 = vadd.xlane.f32.xlu0 %v492_v13  ;;  %1891 = vmatprep.subr.bf16.mxu0 %v2272_v0  ;;  %v449_v44 = vmul.f32 %v2534_v16, %v427_v14  ;;  %v504_v45 = vmul.f32 %v2510_v2, %v436_v39  ;;  %v503_v47 = vmul.f32 %v2510_v2, %v435_v41  ;;  %v437_v48 = vunpack.c.l.bf16 %v2572_v42  ;;  %s2170_s10 = scalar_lea.vmem %s2169_s0, 256  ;;  %p2171_p7 = scmp.lt.s32.totalorder %s2937_s16, %s2169_s0 }
  0x67   : > { %v506_v50 = vmul.f32 %v2510_v2, %v438_v46  ;;  %v452_v52 = vmul.f32 %v2534_v16, %v430_v18  ;;  %v451_v53 = vmul.f32 %v2534_v16, %v429_v20  ;;  %v540_v57 = vsub.f32 1.0, %v539_v55  ;;  %1914 = vmatpush3.bf16.msra.mxu1 %v2520_v8  ;;  %p2167_p5 = pneg %p2166_p10  ;;  %p2172_p9 = scmp.lt.s32.totalorder %s2170_s10, %s2164_s23 }
  0x68   : > { %v2586_v49 = vpack.c.bf16 %v450_v43, %v449_v44  ;;  %v505_v51 = vmul.f32 %v2510_v2, %v437_v48  ;;  %v2601_v58 = vshrl.u32 %v543_v54, 7  ;;  %v454_v59 = vmul.f32 %v2534_v16, %v432_v25  ;;  %1915 = vmatprep.subr.bf16.mxu1 %v2272_v0 }
  0x69   : > { %517 = vadd.xlane.f32.xlu1 %v496_v17  ;;  %v2598_v56 = vpack.c.bf16 %v452_v52, %v451_v53  ;;  %v453_v60 = vmul.f32 %v2534_v16, %v431_v27  ;;  %v541_v61 = vmul.f32 -1e+30, %v540_v57  ;;  %v456_v3 = vmul.f32 %v2534_v16, %v434_v33  ;;  %v2631_v17 = vld [vmem:[%s2484_s14] sm:$0xff]   ;;  %p2173_p11 = por %p2172_p9, %p2171_p7 }
  0x6a   : > { %515 = vadd.xlane.f32.xlu0 %v495_v19  ;;  %v545_v62 = vsub.s32 0, %v2601_v58  ;;  %v455_v5 = vmul.f32 %v2534_v16, %v433_v35  ;;  %v2274_v7 = vmov 0   ;;  %v458_v9 = vmul.f32 %v2534_v16, %v436_v39 }
  0x6b   : > { %v2608_v63 = vpack.c.bf16 %v454_v59, %v453_v60  ;;  %2031 = vset.pattern.permute.xlu1 %v2274_v7  ;;  %2030 = vset.pattern.permute.xlu0 %v2274_v7  ;;  %v457_v10 = vmul.f32 %v2534_v16, %v435_v41  ;;  %v460_v12 = vmul.f32 %v2534_v16, %v438_v46  ;;  %vm756_vm3 = vcmask 261312   ;;  %p2174_p3 = pnand %p2173_p11, %p2167_p5 }
  0x6c   : > { %v546_v2 = vrot.slane %v541_v61, %v545_v62  ;;  %v2616_v6 = vpack.c.bf16 %v456_v3, %v455_v5  ;;  %v459_v13 = vmul.f32 %v2534_v16, %v437_v48  ;;  %1916 = vmatpush3.bf16.msra.mxu1 %v2529_v15  ;;  %vm763_vm4 = vcmask 326912  }
  0x6d   : > { %521 = vadd.xlane.f32.xlu1 %v498_v24  ;;  %1892 = vmatpush3.bf16.xpose.msra.mxu0 %v2565_v37  ;;  %v2622_v11 = vpack.c.bf16 %v458_v9, %v457_v10  ;;  %vm770_vm5 = vcmask 392512   ;;  %vm777_vm6 = vcmask 458112   ;;  %vm784_vm7 = vcmask 523712  }
  0x6e   : > { %519 = vadd.xlane.f32.xlu0 %v497_v26  ;;  %1893 = vmatprep.subr.bf16.mxu0 %v2272_v0  ;;  %v2628_v14 = vpack.c.bf16 %v460_v12, %v459_v13  ;;  %vm791_vm8 = vcmask 589312   ;;  %vm798_vm9 = vcmask 654912   ;;  %vm805_vm10 = vcmask 720512  }
  0x6f   : > { %1917 = vmatprep.subr.bf16.mxu1 %v2272_v0  ;;  %vm812_vm11 = vcmask 786112   ;;  %vm819_vm12 = vcmask 851712   ;;  %vm826_vm13 = vcmask 917312   ;;  %vm833_vm14 = vcmask 982912  }
  0x70   : > { %1918 = vmatpush3.bf16.msra.mxu1 %v2541_v21  ;;  %vm840_vm15 = vcmask 1048512   ;;  %vm1136_vm0 = vcmask 130048  }
  0x71   : > { %525 = vadd.xlane.f32.xlu1 %v500_v32  ;;  %1919 = vmatprep.subr.bf16.mxu1 %v2272_v0 }
  0x72   : > { %523 = vadd.xlane.f32.xlu0 %v499_v34 }
  0x74   : > { %1920 = vmatpush3.bf16.msra.mxu1 %v2550_v28 }
  0x75   : > { %529 = vadd.xlane.f32.xlu1 %v502_v38  ;;  %1894 = vmatpush3.bf16.xpose.msra.mxu0 %v2586_v49 }
  0x76   : > { %527 = vadd.xlane.f32.xlu0 %v501_v40  ;;  %1895 = vmatprep.subr.bf16.mxu0 %v2272_v0 }
  0x77   : > { %1921 = vmatprep.subr.bf16.mxu1 %v2272_v0 }
  0x78   : > { %1922 = vmatpush3.bf16.msra.mxu1 %v2563_v36 }
  0x79   : > { %533 = vadd.xlane.f32.xlu1 %v504_v45  ;;  %1923 = vmatprep.subr.bf16.mxu1 %v2272_v0 }
  0x7a   : > { %531 = vadd.xlane.f32.xlu0 %v503_v47 }
  0x7c   : > { %1924 = vmatpush3.bf16.msra.mxu1 %v2572_v42 }
  0x7d   : > { %537 = vadd.xlane.f32.xlu1 %v506_v50  ;;  %1896 = vmatpush3.bf16.xpose.msra.mxu0 %v2598_v56 }
  0x7e   : > { %535 = vadd.xlane.f32.xlu0 %v505_v51  ;;  %1897 = vmatprep.subr.bf16.mxu0 %v2272_v0 }
  0x7f   : > { %1929 = vmatprep.subr.bf16.mxu1 %v2631_v17 }
  0x85   : > { %1898 = vmatpush3.bf16.xpose.msra.mxu0 %v2608_v63 }
  0x86   : > { %1899 = vmatprep.subr.bf16.mxu0 %v2272_v0 }
  0x8d   : > { %1900 = vmatpush3.bf16.xpose.msra.mxu0 %v2616_v6 }
  0x8e   : > { %552 = vbcast.lane.b32.xlu1 %v546_v2, 264  ;;  %1901 = vmatprep.subr.bf16.mxu0 %v2272_v0 }
  0x92   : > { %556 = vbcast.lane.b32.xlu1 %v546_v2, 272 }
  0x94   : > { %548 = vbcast.lane.b32.xlu0 %v546_v2, 256 }
  0x95   : > { %1902 = vmatpush3.bf16.xpose.msra.mxu0 %v2622_v11 }
  0x96   : > { %560 = vbcast.lane.b32.xlu1 %v546_v2, 280  ;;  %1903 = vmatprep.subr.bf16.mxu0 %v2272_v0 }
  0x98   : > { %564 = vbcast.lane.b32.xlu0 %v546_v2, 288 }
  0x9a   : > { %568 = vbcast.lane.b32.xlu1 %v546_v2, 296 }
  0x9c   : > { %572 = vbcast.lane.b32.xlu0 %v546_v2, 304 }
  0x9d   : > { %1904 = vmatpush3.bf16.xpose.msra.mxu0 %v2628_v14 }
  0x9e   : > { %576 = vbcast.lane.b32.xlu1 %v546_v2, 312  ;;  %1947 = vmatprep.subr.bf16.mxu0 %v2631_v17 }
  0xa0   : > { %580 = vbcast.lane.b32.xlu0 %v546_v2, 320 }
  0xa2   : > { %584 = vbcast.lane.b32.xlu1 %v546_v2, 328 }
  0xa4   : > { %588 = vbcast.lane.b32.xlu0 %v546_v2, 336  ;;  %1906 = vmatmul.mubr.bf16.vlgmr.msra.gmra.mrb[0].mxu0 %v2631_v17 }
  0xa5   : > { %1948 = vmatpush3.bf16.msra.mxu0 %v2631_v17 }
  0xa6   : > { %592 = vbcast.lane.b32.xlu1 %v546_v2, 344 }
  0xa8   : > { %596 = vbcast.lane.b32.xlu0 %v546_v2, 352 }
  0xaa   : > { %600 = vbcast.lane.b32.xlu1 %v546_v2, 360 }
  0xac   : > { %604 = vbcast.lane.b32.xlu0 %v546_v2, 368 }
  0xae   : > { %608 = vbcast.lane.b32.xlu1 %v546_v2, 376 }
  0xee   : > { %v512_v16 = vpop.xlane.xlu1 %511 }
  0xef   : > { %v508_v18 = vpop.xlane.xlu0 %507 }
  0xf2   : > { %v514_v19 = vpop.xlane.xlu1 %513 }
  0xf3   : > { %v510_v20 = vpop.xlane.xlu0 %509 }
  0xf6   : > { %v518_v22 = vpop.xlane.xlu1 %517 }
  0xf7   : > { %v516_v23 = vpop.xlane.xlu0 %515 }
  0xfa   : > { %v522_v24 = vpop.xlane.xlu1 %521 }
  0xfb   : > { %v520_v25 = vpop.xlane.xlu0 %519 }
  0xfe   : > { %v526_v26 = vpop.xlane.xlu1 %525 }
  0xff   : > { %v524_v27 = vpop.xlane.xlu0 %523 }
 0x102   : > { %v530_v30 = vpop.xlane.xlu1 %529 }
 0x103   : > { %v528_v31 = vpop.xlane.xlu0 %527 }
 0x106   : > { %v534_v32 = vpop.xlane.xlu1 %533 }
 0x107   : > { %v532_v33 = vpop.xlane.xlu0 %531 }
 0x10a   : > { %v538_v34 = vpop.xlane.xlu1 %537 }
 0x10b   : > { %v536_v35 = vpop.xlane.xlu0 %535 }
 0x10e   : > { %v553_v38 = vpop.permute.xlu1 %552 }
 0x10f   : > { %v627_v39 = vadd.f32 %v553_v38, %v510_v20  ;;  %v549_v40 = vpop.permute.xlu0 %548 }
 0x110   : > { %v626_v41 = vadd.f32 %v549_v40, %v508_v18 }
 0x111   : > { %687 = vperm.xlu1 %2031, %v627_v39  }
 0x112   : > { %684 = vperm.xlu0 %2030, %v626_v41   ;;  %v557_v43 = vpop.permute.xlu1 %556 }
 0x113   : > { %v628_v44 = vadd.f32 %v557_v43, %v512_v16  ;;  %v565_v45 = vpop.permute.xlu0 %564 }
 0x114   : > { %v630_v47 = vadd.f32 %v565_v45, %v516_v23 }
 0x115   : > { %690 = vperm.xlu1 %2031, %v628_v44  }
 0x116   : > { %v561_v46 = vpop.permute.xlu1 %560 }
 0x117   : > { %v629_v48 = vadd.f32 %v561_v46, %v514_v19  ;;  %v573_v50 = vpop.permute.xlu0 %572 }
 0x118   : > { %v632_v52 = vadd.f32 %v573_v50, %v520_v25  ;;  %v2652_v25 = vand.u32 127, %v543_v54 }
 0x119   : > { %693 = vperm.xlu0 %2030, %v629_v48   ;;  %696 = vperm.xlu1 %2031, %v630_v47  }
 0x11a   : > { %v569_v51 = vpop.permute.xlu1 %568  ;;  %v737_v8 = vadd.s32 4294967288, %v2652_v25  ;;  %v2661_v21 = vsub.s32 %v2652_v25, %v2601_v58  ;;  %v758_v54 = vadd.s32 4294967264, %v2652_v25  ;;  %v765_v39 = vadd.s32 4294967256, %v2652_v25 }
 0x11b   : > { %v631_v53 = vadd.f32 %v569_v51, %v518_v22  ;;  %v581_v55 = vpop.permute.xlu0 %580  ;;  %v772_v43 = vadd.s32 4294967248, %v2652_v25  ;;  %v779_v50 = vadd.s32 4294967240, %v2652_v25 }
 0x11c   : > { %v634_v59 = vadd.f32 %v581_v55, %v524_v27  ;;  %v2657_v27 = vsub.s32 %v737_v8, %v2601_v58  ;;  %v761_v41 = vsub.s32 %v758_v54, %v2601_v58  ;;  %v768_v48 = vsub.s32 %v765_v39, %v2601_v58 }
 0x11d   : > { %699 = vperm.xlu0 %2030, %v631_v53   ;;  %702 = vperm.xlu1 %2031, %v632_v52   ;;  %v775_v53 = vsub.s32 %v772_v43, %v2601_v58  ;;  %v786_v55 = vadd.s32 4294967232, %v2652_v25  ;;  %v814_v8 = vadd.s32 4294967200, %v2652_v25  ;;  %v821_v54 = vadd.s32 4294967192, %v2652_v25 }
 0x11e   : > { %v577_v57 = vpop.permute.xlu1 %576 }
 0x11f   : > { %v633_v60 = vadd.f32 %v577_v57, %v522_v24  ;;  %v589_v61 = vpop.permute.xlu0 %588 }
 0x120   : > { %v636_v3 = vadd.f32 %v589_v61, %v528_v31 }
 0x121   : > { %705 = vperm.xlu0 %2030, %v633_v60   ;;  %708 = vperm.xlu1 %2031, %v634_v59  }
 0x122   : > { %v585_v2 = vpop.permute.xlu1 %584 }
 0x123   : > { %v635_v5 = vadd.f32 %v585_v2, %v526_v26  ;;  %v597_v7 = vpop.permute.xlu0 %596  ;;  %v744_v26 = vadd.s32 4294967280, %v2652_v25  ;;  %v782_v2 = vsub.s32 %v779_v50, %v2601_v58 }
 0x124   : > { %v638_v10 = vadd.f32 %v597_v7, %v532_v33 }
 0x125   : > { %711 = vperm.xlu0 %2030, %v635_v5   ;;  %714 = vperm.xlu1 %2031, %v636_v3   ;;  %v793_v3 = vadd.s32 4294967224, %v2652_v25 }
 0x126   : > { %v593_v9 = vpop.permute.xlu1 %592 }
 0x127   : > { %v637_v12 = vadd.f32 %v593_v9, %v530_v30  ;;  %v605_v13 = vpop.permute.xlu0 %604  ;;  %v751_v30 = vadd.s32 4294967272, %v2652_v25  ;;  %v789_v9 = vsub.s32 %v786_v55, %v2601_v58 }
 0x128   : > { %v640_v18 = vadd.f32 %v605_v13, %v536_v35 }
 0x129   : > { %717 = vperm.xlu0 %2030, %v637_v12   ;;  %720 = vperm.xlu1 %2031, %v638_v10   ;;  %v754_v38 = vsub.s32 %v751_v30, %v2601_v58  ;;  %v800_v10 = vadd.s32 4294967216, %v2652_v25 }
 0x12a   : > { %v601_v16 = vpop.permute.xlu1 %600 }
 0x12b   : > { %v639_v19 = vadd.f32 %v601_v16, %v534_v32  ;;  %v747_v32 = vsub.s32 %v744_v26, %v2601_v58 }
 0x12d   : > { %723 = vperm.xlu0 %2030, %v639_v19   ;;  %726 = vperm.xlu1 %2031, %v640_v18   ;;  %v796_v19 = vsub.s32 %v793_v3, %v2601_v58  ;;  %v469_v3 = vunpack.c.l.bf16 %v2631_v17 }
 0x12e   : > { %v609_v20 = vpop.permute.xlu1 %608 }
 0x12f   : > { %v641_v22 = vadd.f32 %v609_v20, %v538_v34  ;;  %v807_v20 = vadd.s32 4294967208, %v2652_v25 }
 0x131   : > { %729 = vperm.xlu0 %2030, %v641_v22  }
 0x177   : > { %v2647_v23 = vpop.f32.mrb[0].mxu0 }
 0x178   : > { %v1907_v4 = vpop.f32.mrb[1].mxu0 }
 0x179   : > { %v2649_v24 = vpop.f32.mrb[2].mxu0 }
 0x17a   : > { %v1908_v1 = vpop.f32.mrb[3].mxu0 }
 0x17b   : > { %v803_v1 = vsub.s32 %v800_v10, %v2601_v58 }
 0x190   : > { %v688_v15 = vpop.permute.xlu1 %687 }
 0x191   : > { %v685_v31 = vpop.permute.xlu0 %684  ;;  %v741_v34 = vrot.slane %v688_v15, %v2657_v27 }
 0x192   : > { %v736_v35 = vrot.slane %v685_v31, %v2661_v21 }
 0x194   : > { %v691_v33 = vpop.permute.xlu1 %690  ;;  %v743_v46 = vsel %vm742_vm1, %v741_v34, %v736_v35  ;;  %v817_v35 = vsub.s32 %v814_v8, %v2601_v58 }
 0x195   : > { %v748_v40 = vrot.slane %v691_v33, %v747_v32  ;;  %v810_v32 = vsub.s32 %v807_v20, %v2601_v58 }
 0x197   : > { %v750_v51 = vsel %vm749_vm2, %v748_v40, %v743_v46 }
 0x198   : > { %v697_v44 = vpop.permute.xlu1 %696  ;;  %v694_v45 = vpop.permute.xlu0 %693 }
 0x199   : > { %v755_v47 = vrot.slane %v694_v45, %v754_v38  ;;  %v762_v52 = vrot.slane %v697_v44, %v761_v41  ;;  %v828_v38 = vadd.s32 4294967184, %v2652_v25  ;;  %v824_v44 = vsub.s32 %v821_v54, %v2601_v58 }
 0x19a   : > { %v835_v45 = vadd.s32 4294967176, %v2652_v25 }
 0x19b   : > { %v757_v57 = vsel %vm756_vm3, %v755_v47, %v750_v51 }
 0x19c   : > { %v703_v59 = vpop.permute.xlu1 %702  ;;  %v700_v60 = vpop.permute.xlu0 %699  ;;  %v764_v7 = vsel %vm763_vm4, %v762_v52, %v757_v57  ;;  %v838_v55 = vsub.s32 %v835_v45, %v2601_v58 }
 0x19d   : > { %v769_v61 = vrot.slane %v700_v60, %v768_v48  ;;  %v776_v5 = vrot.slane %v703_v59, %v775_v53  ;;  %v831_v48 = vsub.s32 %v828_v38, %v2601_v58 }
 0x19f   : > { %v771_v12 = vsel %vm770_vm5, %v769_v61, %v764_v7  ;;  %v1734_v7 = vld [vmem:[%s3036_s4] ss:$0 sm:$0xff] }
 0x1a0   : > { %v709_v13 = vpop.permute.xlu1 %708  ;;  %v706_v16 = vpop.permute.xlu0 %705  ;;  %v778_v4 = vsel %vm777_vm6, %v776_v5, %v771_v12  ;;  %v478_v12 = vmul.f32 %v1734_v7, %v469_v3 }
 0x1a1   : > { %v783_v18 = vrot.slane %v706_v16, %v782_v2  ;;  %v790_v22 = vrot.slane %v709_v13, %v789_v9  ;;  %v470_v13 = vunpack.c.h.bf16 %v2631_v17  ;;  %v642_v16 = vld [vmem:[%s399_s13] sm:$0x1] }
 0x1a3   : > { %v785_v26 = vsel %vm784_vm7, %v783_v18, %v778_v4  ;;  %v479_v18 = vmul.f32 %v1734_v7, %v470_v13 }
 0x1a4   : > { %v715_v15 = vpop.permute.xlu1 %714  ;;  %v712_v30 = vpop.permute.xlu0 %711  ;;  %v792_v34 = vsel %vm791_vm8, %v790_v22, %v785_v26 }
 0x1a5   : > { %v797_v31 = vrot.slane %v712_v30, %v796_v19  ;;  %v804_v33 = vrot.slane %v715_v15, %v803_v1  ;;  %v643_v19 = vsub.f32 1.0, %v642_v16 }
 0x1a7   : > { %v799_v39 = vsel %vm798_vm9, %v797_v31, %v792_v34  ;;  %v644_v20 = vmul.f32 -1e+30, %v643_v19 }
 0x1a8   : > { %v721_v40 = vpop.permute.xlu1 %720  ;;  %v718_v41 = vpop.permute.xlu0 %717  ;;  %v806_v47 = vsel %vm805_vm10, %v804_v33, %v799_v39 }
 0x1a9   : > { %v811_v43 = vrot.slane %v718_v41, %v810_v32  ;;  %v818_v46 = vrot.slane %v721_v40, %v817_v35 }
 0x1ab   : > { %v813_v50 = vsel %vm812_vm11, %v811_v43, %v806_v47 }
 0x1ac   : > { %v727_v51 = vpop.permute.xlu1 %726  ;;  %v724_v52 = vpop.permute.xlu0 %723  ;;  %v820_v59 = vsel %vm819_vm12, %v818_v46, %v813_v50 }
 0x1ad   : > { %v825_v53 = vrot.slane %v724_v52, %v824_v44  ;;  %v832_v57 = vrot.slane %v727_v51, %v831_v48 }
 0x1af   : > { %v827_v60 = vsel %vm826_vm13, %v825_v53, %v820_v59 }
 0x1b0   : > { %v730_v61 = vpop.permute.xlu0 %729  ;;  %v834_v2 = vsel %vm833_vm14, %v832_v57, %v827_v60 }
 0x1b1   : > { %v839_v25 = vrot.slane %v730_v61, %v838_v55 }
 0x1b3   : > { %v841_v5 = vsel %vm840_vm15, %v839_v25, %v834_v2 }
 0x1b4   : > { %v893_v9 = vadd.f32 %v2649_v24, %v841_v5  ;;  %v890_v10 = vadd.f32 %v2647_v23, %v841_v5  ;;  %v649_v24 = vrot.slane %v644_v20, %v545_v62 }
 0x1b6   : > { %896 = vmax.xlane.f32.xlu1 %v890_v10  ;;  %898 = vmax.xlane.f32.xlu0 %v893_v9 }
 0x1ba   : > { %480 = vadd.xlane.f32.xlu0 %v478_v12 }
 0x1be   : > { %482 = vadd.xlane.f32.xlu0 %v479_v18 }
 0x1c7   : > { %651 = vbcast.lane.b32.xlu1 %v649_v24, 256 }
 0x1d4   : > { %655 = vbcast.lane.b32.xlu0 %v649_v24, 264 }
 0x243   : > { %v897_v23 = vpop.xlane.xlu1 %896  ;;  %v899_v22 = vpop.xlane.xlu0 %898 }
 0x244   : > { %v900_v4 = vsub.f32 %v890_v10, %v897_v23  ;;  %v901_v1 = vsub.f32 %v893_v9, %v899_v22 }
 0x246   : > { %v902_v58 = vpack.c.bf16 %v901_v1, %v900_v4 }
 0x247   : > { %v652_v62 = vpop.permute.xlu1 %651  ;;  %v481_v8 = vpop.xlane.xlu0 %480 }
 0x248   : > { %v904_v26 = vmul.bf16 1069105081, %v902_v58  ;;  %v659_v28 = vadd.f32 %v652_v62, %v481_v8 }
 0x24a   : > { %2050 = vpow.bf16 %v904_v26  ;;  %1018 = vperm.xlu1 %2031, %v659_v28  }
 0x24b   : > { %v483_v15 = vpop.xlane.xlu0 %482 }
 0x24f   : > { %v656_v36 = vpop.permute.xlu0 %655 }
 0x250   : > { %v660_v30 = vadd.f32 %v656_v36, %v483_v15 }
 0x252   : > { %1021 = vperm.xlu1 %2031, %v660_v30  }
 0x255   : > { %v2712_v0 = vpop.eup %2050 }
 0x256   : > { %1926 = vmatmul.mubr.bf16.vlgmr.msra.gmra.mrb[0].mxu1 %v2712_v0 }
 0x257   : > { %1930 = vmatpush3.bf16.xpose.msra.mxu1 %v2631_v17  ;;  %1931 = vmatprep.mubr.bf16.mxu1 %v2552_v29 }
 0x258   : > { %1965 = vmatprep.subr.bf16.mxu1 %v2631_v17 }
 0x25e   : > { %1932 = vmatmul.mubr.bf16.vlgmr.msra.gmra.mrb[4].mxu1 %v2565_v37 }
 0x25f   : > { %1935 = vmatprep.mubr.bf16.mxu1 %v2586_v49  ;;  %1966 = vmatpush3.bf16.msra.mxu1 %v2631_v17 }
 0x266   : > { %1936 = vmatmul.mubr.bf16.gmra.mrb[8].mxu1 %v2598_v56 }
 0x267   : > { %1939 = vmatprep.mubr.bf16.mxu1 %v2608_v63 }
 0x26e   : > { %1940 = vmatmul.mubr.bf16.gmra.mrb[12].mxu1 %v2616_v6 }
 0x26f   : > { %1943 = vmatprep.mubr.bf16.mxu1 %v2622_v11 }
 0x276   : > { %1944 = vmatmul.mubr.bf16.gmra.mrb[16].mxu1 %v2628_v14 }
 0x2c9   : > { %v1019_v42 = vpop.permute.xlu1 %1018 }
 0x2ca   : > { %v1026_v56 = vrot.slane %v1019_v42, %v2661_v21 }
 0x2d1   : > { %v1022_v31 = vpop.permute.xlu1 %1021 }
 0x2d2   : > { %v1030_v17 = vrot.slane %v1022_v31, %v2657_v27 }
 0x2d4   : > { %v1031_v63 = vsel %vm742_vm1, %v1030_v17, %v1026_v56 }
 0x329   : > { %v2726_v29 = vpop.f32.mrb[0].mxu1 }
 0x32a   : > { %v1927_v32 = vpop.f32.mrb[1].mxu1 }
 0x32b   : > { %v2728_v37 = vpop.f32.mrb[2].mxu1 }
 0x32c   : > { %v1928_v49 = vpop.f32.mrb[3].mxu1 }
 0x331   : > { %v1933_v54 = vpop.f32.mrb[4].mxu1 }
 0x332   : > { %v2733_v6 = vadd.f32 %v1933_v54, %v1031_v63  ;;  %v1073_v11 = vpop.f32.mrb[5].mxu1 }
 0x333   : > { %v1934_v14 = vpop.f32.mrb[6].mxu1  ;;  %v2735_v33 = vadd.f32 %v1073_v11, %v1031_v63 }
 0x334   : > { %v2737_v34 = vadd.f32 %v1934_v14, %v1031_v63  ;;  %v1076_v35 = vpop.f32.mrb[7].mxu1  ;;  %v1143_v38 = vsel %vm1136_vm0, %v2733_v6, -inf }
 0x335   : > { %1144 = vmax.xlane.f32.xlu1 %v1143_v38  ;;  %v2741_v27 = vadd.f32 %v1076_v35, %v1031_v63  ;;  %v1137_v39 = vsel %vm1136_vm0, %v2735_v33, -inf }
 0x336   : > { %v1146_v21 = vsel %vm1136_vm0, %v2737_v34, -inf }
 0x337   : > { %1147 = vmax.xlane.f32.xlu0 %v1146_v21  ;;  %v1140_v44 = vsel %vm1136_vm0, %v2741_v27, -inf }
 0x339   : > { %v1937_v40 = vpop.f32.mrb[8].mxu1  ;;  %1138 = vmax.xlane.f32.xlu1 %v1137_v39 }
 0x33a   : > { %v2747_v41 = vadd.f32 %v1937_v40, %v1031_v63  ;;  %v1089_v43 = vpop.f32.mrb[9].mxu1 }
 0x33b   : > { %v1938_v45 = vpop.f32.mrb[10].mxu1  ;;  %1141 = vmax.xlane.f32.xlu0 %v1140_v44  ;;  %v2751_v46 = vadd.f32 %v1089_v43, %v1031_v63 }
 0x33c   : > { %v1092_v47 = vpop.f32.mrb[11].mxu1  ;;  %v1155_v48 = vsel %vm1136_vm0, %v2747_v41, -inf  ;;  %v2771_v18 = vadd.f32 %v1938_v45, %v1031_v63 }
 0x33d   : > { %v1093_v50 = vadd.f32 %v1092_v47, %v1031_v63  ;;  %1156 = vmax.xlane.f32.xlu1 %v1155_v48  ;;  %v1149_v52 = vsel %vm1136_vm0, %v2751_v46, -inf }
 0x33e   : > { %v1158_v22 = vsel %vm1136_vm0, %v2771_v18, -inf }
 0x33f   : > { %v1152_v51 = vsel %vm1136_vm0, %v1093_v50, -inf }
 0x340   : > { %1153 = vmax.xlane.f32.xlu0 %v1152_v51 }
 0x341   : > { %v1941_v53 = vpop.f32.mrb[12].mxu1  ;;  %1150 = vmax.xlane.f32.xlu1 %v1149_v52 }
 0x342   : > { %v2758_v55 = vadd.f32 %v1941_v53, %v1031_v63  ;;  %v1105_v57 = vpop.f32.mrb[13].mxu1 }
 0x343   : > { %v2760_v59 = vadd.f32 %v1105_v57, %v1031_v63  ;;  %v1942_v60 = vpop.f32.mrb[14].mxu1 }
 0x344   : > { %v1108_v61 = vpop.f32.mrb[15].mxu1  ;;  %v1167_v25 = vsel %vm1136_vm0, %v2758_v55, -inf  ;;  %v1117_v2 = vadd.f32 %v1942_v60, %v1031_v63 }
 0x345   : > { %1168 = vmax.xlane.f32.xlu1 %v1167_v25  ;;  %v1161_v3 = vsel %vm1136_vm0, %v2760_v59, -inf  ;;  %v2766_v5 = vadd.f32 %v1108_v61, %v1031_v63 }
 0x346   : > { %1162 = vmax.xlane.f32.xlu0 %v1161_v3  ;;  %v1170_v9 = vsel %vm1136_vm0, %v1117_v2, -inf }
 0x347   : > { %v1164_v20 = vsel %vm1136_vm0, %v2766_v5, -inf }
 0x349   : > { %v1945_v7 = vpop.f32.mrb[16].mxu1 }
 0x34a   : > { %v1121_v10 = vpop.f32.mrb[17].mxu1  ;;  %1171 = vmax.xlane.f32.xlu0 %v1170_v9  ;;  %v2773_v19 = vadd.f32 %v1945_v7, %v1031_v63 }
 0x34b   : > { %v2769_v12 = vadd.f32 %v1121_v10, %v1031_v63  ;;  %v1946_v13 = vpop.f32.mrb[18].mxu1 }
 0x34c   : > { %v1124_v16 = vpop.f32.mrb[19].mxu1  ;;  %v1179_v4 = vsel %vm1136_vm0, %v2773_v19, -inf  ;;  %v2785_v1 = vadd.f32 %v1946_v13, %v1031_v63 }
 0x34d   : > { %v1173_v24 = vsel %vm1136_vm0, %v2769_v12, -inf  ;;  %v2779_v23 = vadd.f32 %v1124_v16, %v1031_v63 }
 0x34e   : > { %1165 = vmax.xlane.f32.xlu0 %v1164_v20  ;;  %1174 = vmax.xlane.f32.xlu1 %v1173_v24  ;;  %v1182_v62 = vsel %vm1136_vm0, %v2785_v1, -inf }
 0x34f   : > { %v1176_v58 = vsel %vm1136_vm0, %v2779_v23, -inf }
 0x352   : > { %1159 = vmax.xlane.f32.xlu0 %v1158_v22  ;;  %1180 = vmax.xlane.f32.xlu1 %v1179_v4 }
 0x356   : > { %1177 = vmax.xlane.f32.xlu0 %v1176_v58 }
 0x35a   : > { %1183 = vmax.xlane.f32.xlu0 %v1182_v62 }
 0x3c2   : > { %v1145_v8 = vpop.xlane.xlu1 %1144 }
 0x3c3   : > { %v1187_v28 = vsub.f32 %v2733_v6, %v1145_v8 }
 0x3c4   : > { %v1148_v26 = vpop.xlane.xlu0 %1147 }
 0x3c5   : > { %v1188_v15 = vsub.f32 %v2737_v34, %v1148_v26 }
 0x3c6   : > { %v1139_v36 = vpop.xlane.xlu1 %1138 }
 0x3c7   : > { %v1202_v30 = vpack.c.bf16 %v1188_v15, %v1187_v28  ;;  %v1185_v32 = vsub.f32 %v2735_v33, %v1139_v36 }
 0x3c8   : > { %v1142_v42 = vpop.xlane.xlu0 %1141 }
 0x3c9   : > { %v1213_v31 = vmul.bf16 1069105081, %v1202_v30  ;;  %v1186_v49 = vsub.f32 %v2741_v27, %v1142_v42 }
 0x3ca   : > { %v1157_v17 = vpop.xlane.xlu1 %1156 }
 0x3cb   : > { %2052 = vpow.bf16 %v1213_v31  ;;  %v1201_v56 = vpack.c.bf16 %v1186_v49, %v1185_v32 }
 0x3cd   : > { %v1210_v63 = vmul.bf16 1069105081, %v1201_v56  ;;  %v1154_v54 = vpop.xlane.xlu0 %1153 }
 0x3ce   : > { %v1190_v11 = vsub.f32 %v1093_v50, %v1154_v54  ;;  %v1151_v14 = vpop.xlane.xlu1 %1150 }
 0x3cf   : > { %2054 = vpow.bf16 %v1210_v63  ;;  %v1189_v6 = vsub.f32 %v2751_v46, %v1151_v14 }
 0x3d1   : > { %v1203_v35 = vpack.c.bf16 %v1190_v11, %v1189_v6 }
 0x3d2   : > { %v1169_v21 = vpop.xlane.xlu1 %1168 }
 0x3d3   : > { %v1216_v34 = vmul.bf16 1069105081, %v1203_v35  ;;  %v1163_v38 = vpop.xlane.xlu0 %1162  ;;  %v1195_v43 = vsub.f32 %v2758_v55, %v1169_v21 }
 0x3d4   : > { %v1193_v53 = vsub.f32 %v2760_v59, %v1163_v38  ;;  %v1191_v59 = vsub.f32 %v2747_v41, %v1157_v17 }
 0x3d5   : > { %2056 = vpow.bf16 %v1216_v34 }
 0x3d6   : > { %v2796_v39 = vpop.eup %2052 }
 0x3d7   : > { %v1172_v33 = vpop.xlane.xlu0 %1171  ;;  %v1236_v27 = vunpack.c.h.bf16 %v2796_v39  ;;  %v1235_v40 = vunpack.c.l.bf16 %v2796_v39 }
 0x3d8   : > { %v1196_v44 = vsub.f32 %v1117_v2, %v1172_v33 }
 0x3d9   : > { %v1258_v45 = vsel %vm1136_vm0, %v1236_v27, 0.0  ;;  %v1255_v46 = vsel %vm1136_vm0, %v1235_v40, 0.0 }
 0x3da   : > { %v2807_v47 = vpop.eup %2054  ;;  %v1206_v48 = vpack.c.bf16 %v1196_v44, %v1195_v43  ;;  %1259 = vadd.xlane.f32.xlu0 %v1258_v45  ;;  %1256 = vadd.xlane.f32.xlu1 %v1255_v46 }
 0x3db   : > { %v1166_v50 = vpop.xlane.xlu0 %1165  ;;  %v1234_v51 = vunpack.c.h.bf16 %v2807_v47  ;;  %v1233_v52 = vunpack.c.l.bf16 %v2807_v47  ;;  %v1175_v2 = vpop.xlane.xlu1 %1174 }
 0x3dc   : > { %v1225_v55 = vmul.bf16 1069105081, %v1206_v48  ;;  %v1194_v57 = vsub.f32 %v2766_v5, %v1166_v50  ;;  %v1197_v41 = vsub.f32 %v2769_v12, %v1175_v2  ;;  %v907_v50 = vunpack.c.h.bf16 %v2712_v0 }
 0x3dd   : > { %v1252_v60 = vsel %vm1136_vm0, %v1234_v51, 0.0  ;;  %v1249_v61 = vsel %vm1136_vm0, %v1233_v52, 0.0 }
 0x3de   : > { %2058 = vpow.bf16 %v1225_v55  ;;  %v1205_v25 = vpack.c.bf16 %v1194_v57, %v1193_v53  ;;  %1253 = vadd.xlane.f32.xlu0 %v1252_v60  ;;  %1250 = vadd.xlane.f32.xlu1 %v1249_v61  ;;  %v906_v53 = vunpack.c.l.bf16 %v2712_v0 }
 0x3df   : > { %v1160_v3 = vpop.xlane.xlu0 %1159  ;;  %v1181_v58 = vpop.xlane.xlu1 %1180 }
 0x3e0   : > { %v2819_v7 = vpop.eup %2056  ;;  %v1222_v9 = vmul.bf16 1069105081, %v1205_v25  ;;  %v1192_v5 = vsub.f32 %v2771_v18, %v1160_v3  ;;  %v1199_v26 = vsub.f32 %v2773_v19, %v1181_v58 }
 0x3e1   : > { %v1238_v10 = vunpack.c.h.bf16 %v2819_v7  ;;  %v1237_v13 = vunpack.c.l.bf16 %v2819_v7 }
 0x3e2   : > { %2060 = vpow.bf16 %v1222_v9  ;;  %v1204_v16 = vpack.c.bf16 %v1192_v5, %v1191_v59 }
 0x3e3   : > { %v1178_v20 = vpop.xlane.xlu0 %1177  ;;  %v1264_v24 = vsel %vm1136_vm0, %v1238_v10, 0.0  ;;  %v1261_v22 = vsel %vm1136_vm0, %v1237_v13, 0.0 }
 0x3e4   : > { %v1219_v4 = vmul.bf16 1069105081, %v1204_v16  ;;  %v1198_v18 = vsub.f32 %v2779_v23, %v1178_v20  ;;  %1265 = vadd.xlane.f32.xlu0 %v1264_v24  ;;  %1262 = vadd.xlane.f32.xlu1 %v1261_v22 }
 0x3e6   : > { %2062 = vpow.bf16 %v1219_v4  ;;  %v1207_v62 = vpack.c.bf16 %v1198_v18, %v1197_v41 }
 0x3e7   : > { %v1184_v8 = vpop.xlane.xlu0 %1183 }
 0x3e8   : > { %v1228_v28 = vmul.bf16 1069105081, %v1207_v62  ;;  %v1200_v15 = vsub.f32 %v2785_v1, %v1184_v8 }
 0x3e9   : > { %v2835_v36 = vpop.eup %2058 }
 0x3ea   : > { %2064 = vpow.bf16 %v1228_v28  ;;  %v1208_v30 = vpack.c.bf16 %v1200_v15, %v1199_v26  ;;  %v1244_v12 = vunpack.c.h.bf16 %v2835_v36  ;;  %v1243_v42 = vunpack.c.l.bf16 %v2835_v36 }
 0x3ec   : > { %v1231_v23 = vmul.bf16 1069105081, %v1208_v30  ;;  %v1282_v31 = vsel %vm1136_vm0, %v1244_v12, 0.0  ;;  %v1279_v19 = vsel %vm1136_vm0, %v1243_v42, 0.0 }
 0x3ed   : > { %v2845_v32 = vpop.eup %2060  ;;  %1283 = vadd.xlane.f32.xlu0 %v1282_v31  ;;  %1280 = vadd.xlane.f32.xlu1 %v1279_v19 }
 0x3ee   : > { %2066 = vpow.bf16 %v1231_v23  ;;  %v1242_v1 = vunpack.c.h.bf16 %v2845_v32  ;;  %v1241_v49 = vunpack.c.l.bf16 %v2845_v32 }
 0x3f0   : > { %v1276_v17 = vsel %vm1136_vm0, %v1242_v1, 0.0  ;;  %v1273_v56 = vsel %vm1136_vm0, %v1241_v49, 0.0 }
 0x3f1   : > { %v2855_v63 = vpop.eup %2062  ;;  %1277 = vadd.xlane.f32.xlu0 %v1276_v17  ;;  %1274 = vadd.xlane.f32.xlu1 %v1273_v56 }
 0x3f2   : > { %v1240_v54 = vunpack.c.h.bf16 %v2855_v63  ;;  %v1239_v11 = vunpack.c.l.bf16 %v2855_v63 }
 0x3f4   : > { %v1270_v14 = vsel %vm1136_vm0, %v1240_v54, 0.0  ;;  %v1267_v6 = vsel %vm1136_vm0, %v1239_v11, 0.0 }
 0x3f5   : > { %v2865_v35 = vpop.eup %2064  ;;  %1271 = vadd.xlane.f32.xlu0 %v1270_v14  ;;  %1268 = vadd.xlane.f32.xlu1 %v1267_v6 }
 0x3f6   : > { %v1246_v34 = vunpack.c.h.bf16 %v2865_v35  ;;  %v1245_v38 = vunpack.c.l.bf16 %v2865_v35 }
 0x3f8   : > { %v1288_v21 = vsel %vm1136_vm0, %v1246_v34, 0.0  ;;  %v1285_v33 = vsel %vm1136_vm0, %v1245_v38, 0.0 }
 0x3f9   : > { %v2875_v43 = vpop.eup %2066  ;;  %1289 = vadd.xlane.f32.xlu0 %v1288_v21  ;;  %1286 = vadd.xlane.f32.xlu1 %v1285_v33 }
 0x3fa   : > { %v1248_v44 = vunpack.c.h.bf16 %v2875_v43  ;;  %v1247_v45 = vunpack.c.l.bf16 %v2875_v43 }
 0x3fc   : > { %v1294_v46 = vsel %vm1136_vm0, %v1248_v44, 0.0  ;;  %v1291_v48 = vsel %vm1136_vm0, %v1247_v45, 0.0 }
 0x3fd   : > { %1295 = vadd.xlane.f32.xlu0 %v1294_v46  ;;  %1292 = vadd.xlane.f32.xlu1 %v1291_v48 }
 0x401   : > { %910 = vadd.xlane.f32.xlu0 %v907_v50  ;;  %908 = vadd.xlane.f32.xlu1 %v906_v53 }
 0x467   : > { %v1260_v55 = vpop.xlane.xlu0 %1259  ;;  %v1257_v57 = vpop.xlane.xlu1 %1256 }
 0x468   : > { %2068 = vrcp.f32 %v1260_v55 }
 0x469   : > { %2070 = vrcp.f32 %v1257_v57 }
 0x46b   : > { %v1254_v60 = vpop.xlane.xlu0 %1253  ;;  %v1251_v61 = vpop.xlane.xlu1 %1250 }
 0x46c   : > { %2072 = vrcp.f32 %v1254_v60 }
 0x46d   : > { %2074 = vrcp.f32 %v1251_v61 }
 0x471   : > { %v1266_v25 = vpop.xlane.xlu0 %1265  ;;  %v1263_v2 = vpop.xlane.xlu1 %1262 }
 0x472   : > { %2076 = vrcp.f32 %v1266_v25  ;;  %v2069_v3 = vpop.eup %2068 }
 0x473   : > { %2078 = vrcp.f32 %v1263_v2  ;;  %v2071_v59 = vpop.eup %2070  ;;  %v1316_v0 = vmul.f32 %v2069_v3, %v1236_v27 }
 0x474   : > { %v1315_v16 = vmul.f32 %v2071_v59, %v1235_v40 }
 0x476   : > { %v2073_v9 = vpop.eup %2072  ;;  %v1330_v18 = vpack.c.bf16 %v1316_v0, %v1315_v16 }
 0x477   : > { %v2075_v5 = vpop.eup %2074  ;;  %v1314_v20 = vmul.f32 %v2073_v9, %v1234_v51 }
 0x478   : > { %v1313_v24 = vmul.f32 %v2075_v5, %v1233_v52 }
 0x47a   : > { %v1284_v22 = vpop.xlane.xlu0 %1283  ;;  %v1281_v41 = vpop.xlane.xlu1 %1280  ;;  %v1329_v4 = vpack.c.bf16 %v1314_v20, %v1313_v24 }
 0x47b   : > { %2080 = vrcp.f32 %v1284_v22 }
 0x47c   : > { %v2077_v58 = vpop.eup %2076  ;;  %1949 = vmatprep.mubr.msk.bf16.mxu0 %vm1136_vm0, %v1329_v4  ;;  %2082 = vrcp.f32 %v1281_v41 }
 0x47d   : > { %v2079_v62 = vpop.eup %2078  ;;  %1950 = vmatmul.mubr.msk.bf16.vlgmr.msra.gmra.mrb[4].mxu0 %vm1136_vm0, %v1330_v18  ;;  %v1318_v39 = vmul.f32 %v2077_v58, %v1238_v10 }
 0x47e   : > { %v1278_v27 = vpop.xlane.xlu0 %1277  ;;  %v1275_v40 = vpop.xlane.xlu1 %1274  ;;  %v1317_v47 = vmul.f32 %v2079_v62, %v1237_v13 }
 0x47f   : > { %2084 = vrcp.f32 %v1278_v27 }
 0x480   : > { %2086 = vrcp.f32 %v1275_v40  ;;  %v1331_v51 = vpack.c.bf16 %v1318_v39, %v1317_v47 }
 0x482   : > { %1953 = vmatprep.mubr.msk.bf16.mxu0 %vm1136_vm0, %v1331_v51  ;;  %v1272_v52 = vpop.xlane.xlu0 %1271  ;;  %v1269_v8 = vpop.xlane.xlu1 %1268 }
 0x483   : > { %2088 = vrcp.f32 %v1272_v52 }
 0x484   : > { %2090 = vrcp.f32 %v1269_v8 }
 0x485   : > { %v2081_v26 = vpop.eup %2080 }
 0x486   : > { %v1290_v28 = vpop.xlane.xlu0 %1289  ;;  %v1287_v15 = vpop.xlane.xlu1 %1286  ;;  %v1324_v7 = vmul.f32 %v2081_v26, %v1244_v12 }
 0x487   : > { %v2083_v30 = vpop.eup %2082  ;;  %2092 = vrcp.f32 %v1290_v28 }
 0x488   : > { %2094 = vrcp.f32 %v1287_v15  ;;  %v1323_v13 = vmul.f32 %v2083_v30, %v1243_v42 }
 0x489   : > { %v2085_v10 = vpop.eup %2084 }
 0x48a   : > { %v2087_v23 = vpop.eup %2086  ;;  %v1296_v31 = vpop.xlane.xlu0 %1295  ;;  %v1322_v17 = vmul.f32 %v2085_v10, %v1242_v1  ;;  %v1334_v33 = vpack.c.bf16 %v1324_v7, %v1323_v13 }
 0x48b   : > { %v1293_v19 = vpop.xlane.xlu1 %1292  ;;  %2096 = vrcp.f32 %v1296_v31  ;;  %v1321_v56 = vmul.f32 %v2087_v23, %v1241_v49 }
 0x48c   : > { %2098 = vrcp.f32 %v1293_v19 }
 0x48d   : > { %v2089_v14 = vpop.eup %2088  ;;  %v1333_v6 = vpack.c.bf16 %v1322_v17, %v1321_v56 }
 0x48e   : > { %v2091_v21 = vpop.eup %2090  ;;  %v911_v46 = vpop.xlane.xlu0 %910  ;;  %v1320_v36 = vmul.f32 %v2089_v14, %v1240_v54 }
 0x48f   : > { %v909_v48 = vpop.xlane.xlu1 %908  ;;  %2100 = vrcp.f32 %v911_v46  ;;  %1957 = vmatprep.mubr.msk.bf16.mxu1 %vm1136_vm0, %v1333_v6  ;;  %v1319_v12 = vmul.f32 %v2091_v21, %v1239_v11 }
 0x490   : > { %2102 = vrcp.f32 %v909_v48  ;;  %1958 = vmatmul.mubr.msk.bf16.vlgmr.msra.gmra.mrb[20].mxu1 %vm1136_vm0, %v1334_v33 }
 0x491   : > { %v2093_v42 = vpop.eup %2092  ;;  %v1332_v32 = vpack.c.bf16 %v1320_v36, %v1319_v12 }
 0x492   : > { %v2095_v1 = vpop.eup %2094  ;;  %v1326_v49 = vmul.f32 %v2093_v42, %v1246_v34 }
 0x493   : > { %1954 = vmatmul.mubr.msk.bf16.gmra.mrb[8].mxu0 %vm1136_vm0, %v1332_v32  ;;  %v1325_v54 = vmul.f32 %v2095_v1, %v1245_v38 }
 0x495   : > { %v2097_v50 = vpop.eup %2096  ;;  %v1335_v53 = vpack.c.bf16 %v1326_v49, %v1325_v54 }
 0x496   : > { %v2099_v63 = vpop.eup %2098  ;;  %v1328_v11 = vmul.f32 %v2097_v50, %v1248_v44 }
 0x497   : > { %1961 = vmatprep.mubr.msk.bf16.mxu1 %vm1136_vm0, %v1335_v53  ;;  %v1327_v55 = vmul.f32 %v2099_v63, %v1247_v45 }
 0x499   : > { %v2101_v34 = vpop.eup %2100  ;;  %v1336_v57 = vpack.c.bf16 %v1328_v11, %v1327_v55 }
 0x49a   : > { %v2103_v60 = vpop.eup %2102  ;;  %v1004_v35 = vmul.f32 %v2101_v34, %v2728_v37 }
 0x49b   : > { %v1003_v38 = vmul.f32 %v2103_v60, %v2726_v29  ;;  %1962 = vmatmul.mubr.msk.bf16.gmra.mrb[24].mxu1 %vm1136_vm0, %v1336_v57 }
 0x49d   : > { %v1804_v61 = vpack.c.bf16 %v1004_v35, %v1003_v38 }
 0x49f   : > { %1805 = vst [vmem:[%s389_s15] sm:$0xff] %v1804_v61  }
 0x4a0   : > { %2177 = shalt.err (!%p2174_p3)
}
 0x4a1   : > { %s2178_s14 = scalar_lea.hbm %s2935_s20, 128  ;;  %s2182_s15 = scalar_lea.hbm %s3039_s7, 256 }
 0x4a2   : > { %p2179_p8 = scmp.ne.s32.totalorder %s2935_s20, %s2178_s14  ;;  %p2183_p4 = scmp.lt.u32.totalorder %s2935_s20, %s3039_s7 }
 0x4a3   : > { %p2184_p6 = scmp.lt.u32.totalorder %s2182_s15, %s2178_s14  ;;  %p2186_p1 = scmp.lt.u32.totalorder %s2178_s14, %s2935_s20 }
 0x4a4   : > { %p2180_p0 = pnand %p2179_p8, %p3055_p12 }
 0x4a5   : > { %p2185_p13 = por %p2184_p6, %p2183_p4 }
 0x4a6   : > { %p2181_p2 = pneg %p2180_p0 }
 0x4a7   : > { %p2187_p10 = por %p2186_p1, %p2185_p13 }
 0x4a9   : > { %p2188_p5 = pnand %p2187_p10, %p2181_p2 }
 0x4ab   : > { %2191 = shalt.err (!%p2188_p5)
}
 0x4ac   : > { %s2276_s24 = smov 64   ;;  %s2277_s23 = smov 4  }
 0x4ad   : > { %1971 = dma.vmem_to_hbm [thread:$0]  (%p3055_p12), %s2937_s16, 128, %s2935_s20, %s1539_s12, %s2276_s24, %s2276_s24, %s2277_s23  }
 0x4ae   : > { %s2968_s21 = scalar_lea.vmem [#allocation8], %s1730_s29  ;;  %s1800_s16 = sshll.u32 %s2345_s9, 10 }
 0x4af   : > { %s1573_s29 = sshll.u32 %s2968_s21, 4  ;;  %s2983_s0 = scalar_lea.hbm %s3040_s8, %s1800_s16  ;;  %s2978_s29 = int_to_ptr.vmem [resolvable:$true] %s1573_s29 }
 0x4b0   : > { %s1544_s10 = scalar_lea.sflag [#allocation9], %s2478_s26  ;;  %s2192_s14 = scalar_lea.vmem %s2978_s29, 1024 }
 0x4b1   : > { %p2193_p7 = scmp.ne.s32.totalorder %s2978_s29, %s2192_s14  ;;  %s2278_s9 = smov [#allocation8]  }
 0x4b2   : > { %s2196_s19 = sshll.u32 %s2278_s9, 4  ;;  %s2197_s19 = int_to_ptr.vmem [resolvable:$false] %s2196_s19 }
 0x4b3   : > { %p2194_p9 = pnand %p2193_p7, %p3055_p12  ;;  %s2198_s13 = scalar_lea.vmem %s2197_s19, 2048 }
 0x4b4   : > { %p2199_p3 = scmp.lt.s32.totalorder %s2978_s29, %s2197_s19  ;;  %p2200_p8 = scmp.lt.s32.totalorder %s2198_s13, %s2192_s14 }
 0x4b5   : > { %p2195_p11 = pneg %p2194_p9 }
 0x4b6   : > { %p2201_p0 = por %p2200_p8, %p2199_p3 }
 0x4b8   : > { %p2202_p2 = pnand %p2201_p0, %p2195_p11 }
 0x550   : > { %v1951_v29 = vpop.f32.mrb[4].mxu0 }
 0x551   : > { %v1395_v37 = vpop.f32.mrb[5].mxu0 }
 0x552   : > { %v1952_v43 = vpop.f32.mrb[6].mxu0 }
 0x553   : > { %v1814_v44 = vpack.c.bf16 %v1952_v43, %v1951_v29  ;;  %v1398_v45 = vpop.f32.mrb[7].mxu0 }
 0x554   : > { %v1809_v25 = vpack.c.bf16 %v1398_v45, %v1395_v37 }
 0x555   : > { %1846 = vst [vmem:[%s2968_s21 + $0x8] sm:$0xff] %v1814_v44  }
 0x556   : > { %1810 = vst [vmem:[%s2968_s21] sm:$0xff] %v1809_v25  }
 0x563   : > { %v1959_v2 = vpop.f32.mrb[20].mxu1 }
 0x564   : > { %v1427_v3 = vpop.f32.mrb[21].mxu1 }
 0x565   : > { %v1960_v59 = vpop.f32.mrb[22].mxu1 }
 0x566   : > { %v1834_v9 = vpack.c.bf16 %v1960_v59, %v1959_v2  ;;  %v1955_v5 = vpop.f32.mrb[8].mxu0  ;;  %v1430_v0 = vpop.f32.mrb[23].mxu1 }
 0x567   : > { %v1829_v16 = vpack.c.bf16 %v1430_v0, %v1427_v3  ;;  %v1411_v20 = vpop.f32.mrb[9].mxu0 }
 0x568   : > { %1850 = vst [vmem:[%s2968_s21 + $0x28] sm:$0xff] %v1834_v9   ;;  %v1956_v24 = vpop.f32.mrb[10].mxu0 }
 0x569   : > { %1849 = vst [vmem:[%s2968_s21 + $0x20] sm:$0xff] %v1829_v16   ;;  %v1824_v22 = vpack.c.bf16 %v1956_v24, %v1955_v5  ;;  %v1414_v41 = vpop.f32.mrb[11].mxu0 }
 0x56a   : > { %v1819_v4 = vpack.c.bf16 %v1414_v41, %v1411_v20 }
 0x56b   : > { %1848 = vst [vmem:[%s2968_s21 + $0x18] sm:$0xff] %v1824_v22  }
 0x56c   : > { %1847 = vst [vmem:[%s2968_s21 + $0x10] sm:$0xff] %v1819_v4  }
 0x56e   : > { %v1963_v18 = vpop.f32.mrb[24].mxu1 }
 0x56f   : > { %v1443_v58 = vpop.f32.mrb[25].mxu1 }
 0x570   : > { %v1964_v62 = vpop.f32.mrb[26].mxu1 }
 0x571   : > { %v1844_v39 = vpack.c.bf16 %v1964_v62, %v1963_v18  ;;  %v1446_v27 = vpop.f32.mrb[27].mxu1 }
 0x572   : > { %v1839_v40 = vpack.c.bf16 %v1446_v27, %v1443_v58 }
 0x573   : > { %1852 = vst [vmem:[%s2968_s21 + $0x38] sm:$0xff] %v1844_v39  }
 0x574   : > { %1851 = vst [vmem:[%s2968_s21 + $0x30] sm:$0xff] %v1839_v40  }
 0x575   : > { %2205 = shalt.err (!%p2202_p2)
}
 0x576   : > { %s2206_s15 = scalar_lea.hbm %s2983_s0, 1024  ;;  %s2210_s21 = scalar_lea.hbm %s3040_s8, 2048 }
 0x577   : > { %p2207_p4 = scmp.ne.s32.totalorder %s2983_s0, %s2206_s15  ;;  %p2211_p1 = scmp.lt.u32.totalorder %s2983_s0, %s3040_s8 }
 0x578   : > { %p2212_p10 = scmp.lt.u32.totalorder %s2210_s21, %s2206_s15  ;;  %p2214_p7 = scmp.lt.u32.totalorder %s2206_s15, %s2983_s0 }
 0x579   : > { %p2208_p6 = pnand %p2207_p4, %p3055_p12 }
 0x57a   : > { %p2213_p5 = por %p2212_p10, %p2211_p1 }
 0x57b   : > { %p2209_p13 = pneg %p2208_p6 }
 0x57c   : > { %p2215_p9 = por %p2214_p7, %p2213_p5 }
 0x57e   : > { %p2216_p11 = pnand %p2215_p9, %p2209_p13 }
 0x580   : > { %2219 = shalt.err (!%p2216_p11)
}
 0x581   : > { %1972 = dma.vmem_to_hbm [thread:$0]  (%p3055_p12), %s2978_s29, 1024, %s2983_s0, %s1544_s10, %s2276_s24, %s2276_s24, %s2277_s23  }
 0x582 PF: > { %s1588_s12 = sand.u32 1, %s2254_s27   ;;  %p3056_p3 = scmp.ne.s32.totalorder %s3050_s18, 0 }
 0x583   : > { %p3057_p8 = scmp.ge.s32.totalorder %s2266_s30, 2  ;;  %s1589_s14 = scalar_lea.sflag [#allocation4], %s1588_s12 }
 0x585   : > { %p1983_p0 = pnand %p3057_p8, %p3056_p3 }
 0x587   : > { %2245 = dma.done.wait (!%p1983_p0), %s1589_s14, 128  }
 0x588   : > { %2247 = vsyncadd (!%p1983_p0), %s1589_s14, 4294967168  ;;  %s1598_s17 = scalar_lea.sflag [#allocation9], %s1588_s12 }
 0x589   : > { %2249 = dma.done.wait (!%p1983_p0), %s1598_s17, 1024  }
 0x58a   : > { %2251 = vsyncadd (!%p1983_p0), %s1598_s17, 4294966272  ;;  %s3058_s26 = sld [smem:[#allocation14_spill]]  ;;  %s3059_s29 = sld [smem:[#allocation15_spill]] }
 0x58b   : > { %p28_p12 = scmp.ge.s32.totalorder %s2349_s11, 4   ;;  %s3060_s27 = smov %s2258_s28 }
 0x58c   : > { %s3062_s30 = smov %s2349_s11 }
 0x58d   :  { %30 = sbr.rel (!%p28_p12) target bundleno = 11 (0xb), region = 129 }
 0x590   : > { %s3061_s28 = smov %s3058_s26 }
 0x594   :  { %1603 = vsyncpa [#allocation3], 1 }
 0x595   :  { %1605 = vsyncpa [#allocation3 + $0x1], 1 }
 0x596   :  { %1606 = vsyncpa [#allocation6], 1 }
 0x597   :  { %1608 = vsyncpa [#allocation6 + $0x1], 1 }
 0x598   :  { %1609 = vsyncpa [#allocation4], 1 }
 0x599   :  { %1611 = vsyncpa [#allocation4 + $0x1], 1 }
 0x59a   :  { %1612 = vsyncpa [#allocation9], 1 }
 0x59b   :  { %1614 = vsyncpa [#allocation9 + $0x1], 1 }

</bundles_post_ra>
